<compile_context>
chip_gen: v7x
topology: tpu7x:2x2x1
jax: 0.10.0
libtpu: 0.0.40
codegen_flags: <defaults>
</compile_context>

<pallas_src>
import functools

import jax
import jax.numpy as jnp
from jax.experimental import pallas as pl
from jax.experimental.pallas import tpu as pltpu


def _round_up(x, m):
    return ((x + m - 1) // m) * m


# ----------------------------------------------------------------------------
# Fused forward kernel: one grid step per encoder layer.
#   step 0        : feature-extractor surrogate -> x scratch
#   every step l  : one encoder layer on x scratch (weights double-buffered)
#   last step     : classifier head -> out_ref
# ----------------------------------------------------------------------------
def _fused_forward_kernel(
    feat_ref,                    # (S, 2*in_feat) f32, constant block
    wf_ref,                      # (2*in_feat, E) bf16, constant block
    hb_ref,                      # (8, HW) f32: row0 bf, row1 bc1, row2 bc2(pad)
    wqkv_ref,                    # (E, 3E)  bf16, per-layer block (scale folded into Q)
    wo_ref,                      # (E, E)   bf16, per-layer block
    w1_ref,                      # (E, dff) bf16, per-layer block
    w2_ref,                      # (dff, E) bf16, per-layer block
    lb_ref,                      # (8, BW)  f32 per-layer bias/LN slab
    wc1_ref,                     # (E, 512) bf16, constant block
    wc2_ref,                     # (512, n_cls_pad) bf16, constant block
    out_ref,                     # (S, n_cls_pad) f32, constant block (written last step)
    x_ref,                       # VMEM scratch (S, E) f32 — activation carried across layers
    *, n_heads, b_real, eps):

    l = pl.program_id(0)
    S, E = x_ref.shape
    Dh = E // n_heads
    d_ff = w1_ref.shape[1]
    d_hidden = wc1_ref.shape[1]
    n_cls_pad = out_ref.shape[1]
    bf16 = jnp.bfloat16

    def layer_norm(v, g, b):
        mu = jnp.mean(v, axis=-1, keepdims=True)
        var = jnp.mean((v - mu) ** 2, axis=-1, keepdims=True)
        return (v - mu) * jax.lax.rsqrt(var + eps) * g + b

    hb = hb_ref[...]

    # ---- step 0: feature extractor surrogate (Linear + ReLU), zero pad rows --
    @pl.when(l == 0)
    def _():
        x0 = jnp.dot(feat_ref[...].astype(bf16), wf_ref[...],
                     preferred_element_type=jnp.float32)
        x0 = jnp.maximum(x0 + hb[0:1, :E], 0.0)
        row_ids = jax.lax.broadcasted_iota(jnp.int32, (S, 1), 0)
        x_ref[...] = jnp.where(row_ids < b_real, x0, 0.0)   # concat([f(x), pad])

    # ---- one post-LN encoder layer (every grid step) ----
    x = x_ref[...]                                           # f32 (S, E)
    lb = lb_ref[...]                                         # (8, BW) f32

    qkv = jnp.dot(x.astype(bf16), wqkv_ref[...],
                  preferred_element_type=jnp.float32) + lb[0:1, :3 * E]

    wo = wo_ref[...]                                         # (E, E) bf16
    attn = jnp.zeros((S, E), jnp.float32)
    for h in range(n_heads):
        qh = qkv[:, h * Dh:(h + 1) * Dh]                     # (S, Dh) f32 (scale pre-folded)
        kh = qkv[:, E + h * Dh:E + (h + 1) * Dh]
        vh = qkv[:, 2 * E + h * Dh:2 * E + (h + 1) * Dh]
        s = jax.lax.dot_general(qh, kh, (((1,), (1,)), ((), ())),
                                preferred_element_type=jnp.float32)   # (S, S)
        s = s - jnp.max(s, axis=-1, keepdims=True)
        p = jnp.exp(s)
        p = p / jnp.sum(p, axis=-1, keepdims=True)           # exact softmax
        hv = jnp.dot(p, vh, preferred_element_type=jnp.float32)       # (S, Dh)
        # Fold the head concat into the Wo contraction (no lane-axis concat).
        attn = attn + jnp.dot(hv.astype(bf16), wo[h * Dh:(h + 1) * Dh, :],
                              preferred_element_type=jnp.float32)
    attn = attn + lb[1:2, :E]
    x = layer_norm(x + attn, lb[2:3, :E], lb[3:4, :E])       # dropout = identity

    h1 = jnp.dot(x.astype(bf16), w1_ref[...],
                 preferred_element_type=jnp.float32) + lb[4:5, :d_ff]
    h1 = jnp.maximum(h1, 0.0)
    h2 = jnp.dot(h1.astype(bf16), w2_ref[...],
                 preferred_element_type=jnp.float32) + lb[5:6, :E]
    x = layer_norm(x + h2, lb[6:7, :E], lb[7:8, :E])
    x_ref[...] = x

    # ---- last step: classifier head on all padded rows (wrapper slices [:b]) --
    @pl.when(l == pl.num_programs(0) - 1)
    def _():
        c1 = jnp.dot(x.astype(bf16), wc1_ref[...],
                     preferred_element_type=jnp.float32) + hb[1:2, :d_hidden]
        out = jnp.dot(c1.astype(bf16), wc2_ref[...],
                      preferred_element_type=jnp.float32) + hb[2:3, :n_cls_pad]
        out_ref[...] = out.astype(out_ref.dtype)


def fused_forward(feat_in, params, *, n_layers, n_heads, b_real, n_cls, eps=1e-5):
    """Runs the whole HopeV1InsAt forward in a single layer-pipelined pallas_call."""
    S, F2 = feat_in.shape
    E = params["wqkv"].shape[1]
    d_ff = params["w1"].shape[2]
    d_hidden = params["wc1"].shape[1]
    n_cls_pad = params["wc2"].shape[1]
    HW = params["head_bias"].shape[1]
    BW = params["layer_bias"].shape[2]

    kernel = functools.partial(_fused_forward_kernel,
                               n_heads=n_heads, b_real=b_real, eps=eps)

    out = pl.pallas_call(
        kernel,
        out_shape=jax.ShapeDtypeStruct((S, n_cls_pad), jnp.float32),
        grid=(n_layers,),
        in_specs=[
            pl.BlockSpec((S, F2), lambda l: (0, 0)),                 # feat_in
            pl.BlockSpec((F2, E), lambda l: (0, 0)),                 # wf
            pl.BlockSpec((8, HW), lambda l: (0, 0)),                 # head bias slab
            pl.BlockSpec((None, E, 3 * E), lambda l: (l, 0, 0)),     # wqkv[l]
            pl.BlockSpec((None, E, E), lambda l: (l, 0, 0)),         # wo[l]
            pl.BlockSpec((None, E, d_ff), lambda l: (l, 0, 0)),      # w1[l]
            pl.BlockSpec((None, d_ff, E), lambda l: (l, 0, 0)),      # w2[l]
            pl.BlockSpec((None, 8, BW), lambda l: (l, 0, 0)),        # layer bias slab[l]
            pl.BlockSpec((E, d_hidden), lambda l: (0, 0)),           # wc1
            pl.BlockSpec((d_hidden, n_cls_pad), lambda l: (0, 0)),   # wc2 (lane-padded)
        ],
        out_specs=pl.BlockSpec((S, n_cls_pad), lambda l: (0, 0)),
        scratch_shapes=[pltpu.VMEM((S, E), jnp.float32)],
        compiler_params=pltpu.CompilerParams(
            dimension_semantics=("arbitrary",),      # sequential carry through x
            vmem_limit_bytes=64 * 1024 * 1024),
    )(feat_in, params["wf"], params["head_bias"],
      params["wqkv"], params["wo"], params["w1"], params["w2"],
      params["layer_bias"], params["wc1"], params["wc2"])
    return out[:, :n_cls]


# ----------------------------------------------------------------------------
# Parameter construction (deterministic, in-script) with kernel-side packing:
#  * weights in bf16, attention scale folded into Wq / bq,
#  * all per-layer biases + LN params packed into one (L, 8, BW) f32 slab,
#  * feature/classifier biases packed into one (8, HW) f32 slab,
#  * classifier output weight lane-padded to a multiple of 128.
# ----------------------------------------------------------------------------
def init_params(key, in_feat, embed_len, d_ff, n_layers, n_heads,
                n_cls=230, d_hidden=512):
    E = embed_len
    Dh = E // n_heads
    scale = 1.0 / float(Dh) ** 0.5
    n_cls_pad = _round_up(n_cls, 128)
    HW = _round_up(max(E, d_hidden, n_cls_pad), 128)
    BW = _round_up(max(3 * E, d_ff), 128)

    def dense(k, fan_in, fan_out):
        kw, kb = jax.random.split(k)
        w = jax.random.normal(kw, (fan_in, fan_out), jnp.float32) * 0.02
        b = jax.random.normal(kb, (fan_out,), jnp.float32) * 0.02
        return w, b

    keys = jax.random.split(key, 3 + n_layers)
    wf, bf = dense(keys[0], 2 * in_feat, E)

    wqkv_l, wo_l, w1_l, w2_l, lb_l = [], [], [], [], []
    for l in range(n_layers):
        lk = jax.random.split(keys[1 + l], 6)
        wq, bq = dense(lk[0], E, E)
        wk, bk = dense(lk[1], E, E)
        wv, bv = dense(lk[2], E, E)
        wo, bo = dense(lk[3], E, E)
        w1, b1 = dense(lk[4], E, d_ff)
        w2, b2 = dense(lk[5], d_ff, E)
        # Fold 1/sqrt(Dh) attention scale into Wq / bq (kernel does no scaling).
        wq = wq * scale
        bq = bq * scale
        wqkv_l.append(jnp.concatenate([wq, wk, wv], axis=1))          # (E, 3E)
        wo_l.append(wo)
        w1_l.append(w1)
        w2_l.append(w2)

        def row(v):
            return jnp.pad(v, (0, BW - v.shape[0]))

        lb_l.append(jnp.stack([
            row(jnp.concatenate([bq, bk, bv])),      # 0: bqkv
            row(bo),                                 # 1: bo
            row(jnp.ones((E,), jnp.float32)),        # 2: ln1 gamma
            row(jnp.zeros((E,), jnp.float32)),       # 3: ln1 beta
            row(b1),                                 # 4: b1
            row(b2),                                 # 5: b2
            row(jnp.ones((E,), jnp.float32)),        # 6: ln2 gamma
            row(jnp.zeros((E,), jnp.float32)),       # 7: ln2 beta
        ]))                                          # (8, BW)

    wc1, bc1 = dense(keys[1 + n_layers], E, d_hidden)
    wc2, bc2 = dense(keys[2 + n_layers], d_hidden, n_cls)

    def hrow(v):
        return jnp.pad(v, (0, HW - v.shape[0]))

    head_bias = jnp.stack([hrow(bf), hrow(bc1), hrow(bc2)]
                          + [jnp.zeros((HW,), jnp.float32)] * 5)       # (8, HW)

    bf16 = jnp.bfloat16
    return {
        "wf": wf.astype(bf16),                                         # (2*in_feat, E)
        "head_bias": head_bias,                                        # (8, HW) f32
        "wqkv": jnp.stack(wqkv_l).astype(bf16),                        # (L, E, 3E)
        "wo": jnp.stack(wo_l).astype(bf16),                            # (L, E, E)
        "w1": jnp.stack(w1_l).astype(bf16),                            # (L, E, d_ff)
        "w2": jnp.stack(w2_l).astype(bf16),                            # (L, d_ff, E)
        "layer_bias": jnp.stack(lb_l),                                 # (L, 8, BW) f32
        "wc1": wc1.astype(bf16),                                       # (E, 512)
        "wc2": jnp.pad(wc2, ((0, 0), (0, n_cls_pad - n_cls))).astype(bf16),
    }


# ----------------------------------------------------------------------------
# Forward pass wrapper (mirrors HopeV1InsAt.forward)
# ----------------------------------------------------------------------------
def hope_v1_insat_forward(params, intensity, angle, batch_size, n_heads,
                          n_layers, n_cls=230):
    b = intensity.shape[0]
    pad_len = batch_size - b

    # self.f(intensity, angle) surrogate input; pad rows to batch_size so the
    # fused kernel sees an (S, 2*in_feat) slab (padded rows zeroed inside the
    # kernel, reproducing concat([x, self.pad[:pad_len]])).
    feat_in = jnp.concatenate([intensity, angle], axis=-1)
    feat_in = jnp.concatenate(
        [feat_in, jnp.zeros((pad_len, feat_in.shape[1]), feat_in.dtype)], axis=0)

    # `masked` is built but unused in the reference forward; reproduce that.
    zeros = jnp.zeros((batch_size,), feat_in.dtype)
    ones = jnp.ones((batch_size,), feat_in.dtype)
    _masked = jnp.concatenate([zeros[:b], ones[:pad_len]], axis=0).reshape(1, 1, -1)

    out_full = fused_forward(feat_in, params,
                             n_layers=n_layers, n_heads=n_heads,
                             b_real=b, n_cls=n_cls)        # (batch_size, 230)
    return out_full[:b]                                    # x = self.cls(x[:b])


# ----------------------------------------------------------------------------
if __name__ == "__main__":
    # Small shapes consistent with the module structure.
    b = 4             # actual samples in the forward call
    batch_size = 8    # capacity / transformer sequence length
    in_feat = 32      # per-input feature dim for intensity / angle
    embed_len = 128   # scaled-down from 1056
    n_heads = 4
    d_ff = 256        # scaled-down from 1024
    n_layers = 2      # scaled-down from 4
    n_cls = 230

    key = jax.random.PRNGKey(0)
    kp, ki, ka = jax.random.split(key, 3)
    params = init_params(kp, in_feat, embed_len, d_ff, n_layers, n_heads, n_cls)

    intensity = jax.random.normal(ki, (b, in_feat), jnp.float32)
    angle = jax.random.normal(ka, (b, in_feat), jnp.float32)

    out = hope_v1_insat_forward(params, intensity, angle, batch_size,
                                n_heads, n_layers, n_cls)
    out = jax.block_until_ready(out)
    assert out.shape == (b, n_cls), out.shape
    print("KERNEL_OK")
</pallas_src>

<mosaic_0001>
module attributes {stable_mosaic.version = 11 : i64} {
  func.func @_fused_forward_kernel(%arg0: i32, %arg1: memref<8x64xf32, #tpu.memory_space<vmem>>, %arg2: memref<64x128xbf16, #tpu.memory_space<vmem>>, %arg3: memref<8x512xf32, #tpu.memory_space<vmem>>, %arg4: memref<1x128x384xbf16, #tpu.memory_space<vmem>>, %arg5: memref<1x128x128xbf16, #tpu.memory_space<vmem>>, %arg6: memref<1x128x256xbf16, #tpu.memory_space<vmem>>, %arg7: memref<1x256x128xbf16, #tpu.memory_space<vmem>>, %arg8: memref<1x8x384xf32, #tpu.memory_space<vmem>>, %arg9: memref<128x512xbf16, #tpu.memory_space<vmem>>, %arg10: memref<512x256xbf16, #tpu.memory_space<vmem>>, %arg11: memref<8x256xf32, #tpu.memory_space<vmem>>, %arg12: memref<8x128xf32, #tpu.memory_space<vmem>>) attributes {dimension_semantics = [#tpu.dimension_semantics<arbitrary>], iteration_bounds = array<i64: 2>, scalar_prefetch = 0 : i64, scratch_operands = 1 : i64, tpu.core_type = #tpu.core_type<tc>, window_params = [{pipeline_mode = #tpu.pipeline_mode<synchronous>, transform_indices = @transform_0, window_bounds = array<i64: 8, 64>}, {pipeline_mode = #tpu.pipeline_mode<synchronous>, transform_indices = @transform_1, window_bounds = array<i64: 64, 128>}, {pipeline_mode = #tpu.pipeline_mode<synchronous>, transform_indices = @transform_2, window_bounds = array<i64: 8, 512>}, {transform_indices = @transform_3, window_bounds = array<i64: 1, 128, 384>}, {transform_indices = @transform_4, window_bounds = array<i64: 1, 128, 128>}, {transform_indices = @transform_5, window_bounds = array<i64: 1, 128, 256>}, {transform_indices = @transform_6, window_bounds = array<i64: 1, 256, 128>}, {transform_indices = @transform_7, window_bounds = array<i64: 1, 8, 384>}, {pipeline_mode = #tpu.pipeline_mode<synchronous>, transform_indices = @transform_8, window_bounds = array<i64: 128, 512>}, {pipeline_mode = #tpu.pipeline_mode<synchronous>, transform_indices = @transform_9, window_bounds = array<i64: 512, 256>}, {pipeline_mode = #tpu.pipeline_mode<synchronous>, transform_indices = @transform_10, window_bounds = array<i64: 8, 256>}]} {
    %c0 = arith.constant 0 : index
    %c0_0 = arith.constant 0 : index
    %0 = vector.load %arg3[%c0, %c0_0] : memref<8x512xf32, #tpu.memory_space<vmem>>, vector<8x512xf32>
    %c0_i32 = arith.constant 0 : i32
    %1 = arith.cmpi eq, %arg0, %c0_i32 : i32
    %2 = arith.extui %1 : i1 to i32
    %c0_i32_1 = arith.constant 0 : i32
    %3 = arith.cmpi ne, %2, %c0_i32_1 : i32
    scf.if %3 {
      %c0_56 = arith.constant 0 : index
      %c0_57 = arith.constant 0 : index
      %162 = vector.load %arg1[%c0_56, %c0_57] : memref<8x64xf32, #tpu.memory_space<vmem>>, vector<8x64xf32>
      %163 = arith.truncf %162 : vector<8x64xf32> to vector<8x64xbf16>
      %c0_58 = arith.constant 0 : index
      %c0_59 = arith.constant 0 : index
      %164 = vector.load %arg2[%c0_58, %c0_59] : memref<64x128xbf16, #tpu.memory_space<vmem>>, vector<64x128xbf16>
      %cst_60 = arith.constant dense<0.000000e+00> : vector<8x128xf32>
      %165 = tpu.matmul %163, %164, %cst_60 {dimension_numbers = #tpu.dot_dimension_numbers<[1], [0], [0], [1], [0, 0, 1, 1], [], []>} : vector<8x64xbf16>, vector<64x128xbf16>, vector<8x128xf32> -> vector<8x128xf32>
      %166 = vector.extract_strided_slice %0 {offsets = [0, 0], sizes = [1, 128], strides = [1, 1]} : vector<8x512xf32> to vector<1x128xf32>
      %167 = vector.broadcast %166 : vector<1x128xf32> to vector<8x128xf32>
      %168 = arith.addf %165, %167 : vector<8x128xf32>
      %cst_61 = arith.constant 0.000000e+00 : f32
      %169 = vector.broadcast %cst_61 : f32 to vector<8x128xf32>
      %170 = arith.maximumf %168, %169 : vector<8x128xf32>
      %171 = tpu.iota {dimensions = array<i32: 0>} : vector<8x1xi32>
      %c4_i32 = arith.constant 4 : i32
      %172 = vector.broadcast %c4_i32 : i32 to vector<8x1xi32>
      %173 = arith.cmpi slt, %171, %172 : vector<8x1xi32>
      %cst_62 = arith.constant 0.000000e+00 : f32
      %174 = vector.shape_cast %173 : vector<8x1xi1> to vector<8x1xi1>
      %175 = vector.broadcast %174 : vector<8x1xi1> to vector<8x128xi1>
      %176 = vector.broadcast %cst_62 : f32 to vector<8x128xf32>
      %177 = arith.select %175, %170, %176 : vector<8x128xi1>, vector<8x128xf32>
      %c0_63 = arith.constant 0 : index
      %c0_64 = arith.constant 0 : index
      %178 = vector.load %arg12[%c0_63, %c0_64] : memref<8x128xf32, #tpu.memory_space<vmem>>, vector<8x128xf32>
      tpu.vector_store %arg12[%c0_63, %c0_64], %177 {strides = array<i32>} : memref<8x128xf32, #tpu.memory_space<vmem>>, vector<8x128xf32>,
    } else {
    }
    %c0_2 = arith.constant 0 : index
    %c0_3 = arith.constant 0 : index
    %4 = vector.load %arg12[%c0_2, %c0_3] : memref<8x128xf32, #tpu.memory_space<vmem>>, vector<8x128xf32>
    %c0_4 = arith.constant 0 : index
    %c0_5 = arith.constant 0 : index
    %c0_6 = arith.constant 0 : index
    %5 = vector.load %arg8[%c0_4, %c0_5, %c0_6] : memref<1x8x384xf32, #tpu.memory_space<vmem>>, vector<1x8x384xf32>
    %6 = vector.shape_cast %5 : vector<1x8x384xf32> to vector<8x384xf32>
    %7 = arith.truncf %4 : vector<8x128xf32> to vector<8x128xbf16>
    %c0_7 = arith.constant 0 : index
    %c0_8 = arith.constant 0 : index
    %c0_9 = arith.constant 0 : index
    %8 = vector.load %arg4[%c0_7, %c0_8, %c0_9] : memref<1x128x384xbf16, #tpu.memory_space<vmem>>, vector<1x128x384xbf16>
    %9 = vector.shape_cast %8 : vector<1x128x384xbf16> to vector<128x384xbf16>
    %cst = arith.constant dense<0.000000e+00> : vector<8x384xf32>
    %10 = tpu.matmul %7, %9, %cst {dimension_numbers = #tpu.dot_dimension_numbers<[1], [0], [0], [1], [0, 0, 1, 1], [], []>} : vector<8x128xbf16>, vector<128x384xbf16>, vector<8x384xf32> -> vector<8x384xf32>
    %11 = vector.extract_strided_slice %6 {offsets = [0, 0], sizes = [1, 384], strides = [1, 1]} : vector<8x384xf32> to vector<1x384xf32>
    %12 = vector.broadcast %11 : vector<1x384xf32> to vector<8x384xf32>
    %13 = arith.addf %10, %12 : vector<8x384xf32>
    %c0_10 = arith.constant 0 : index
    %c0_11 = arith.constant 0 : index
    %c0_12 = arith.constant 0 : index
    %14 = vector.load %arg5[%c0_10, %c0_11, %c0_12] : memref<1x128x128xbf16, #tpu.memory_space<vmem>>, vector<1x128x128xbf16>
    %15 = vector.shape_cast %14 : vector<1x128x128xbf16> to vector<128x128xbf16>
    %cst_13 = arith.constant 0.000000e+00 : f32
    %16 = vector.broadcast %cst_13 : f32 to vector<8x128xf32>
    %17 = vector.extract_strided_slice %13 {offsets = [0, 0], sizes = [8, 32], strides = [1, 1]} : vector<8x384xf32> to vector<8x32xf32>
    %18 = vector.extract_strided_slice %13 {offsets = [0, 128], sizes = [8, 32], strides = [1, 1]} : vector<8x384xf32> to vector<8x32xf32>
    %19 = vector.extract_strided_slice %13 {offsets = [0, 256], sizes = [8, 32], strides = [1, 1]} : vector<8x384xf32> to vector<8x32xf32>
    %cst_14 = arith.constant dense<0.000000e+00> : vector<8x8xf32>
    %20 = tpu.matmul %17, %18, %cst_14 {dimension_numbers = #tpu.dot_dimension_numbers<[1], [1], [0], [0], [0, 0, 1, 0], [], []>} : vector<8x32xf32>, vector<8x32xf32>, vector<8x8xf32> -> vector<8x8xf32>
    %cst_15 = arith.constant dense<0xFF800000> : vector<8xf32>
    %21 = vector.multi_reduction <maximumf>, %20, %cst_15 [1] : vector<8x8xf32> to vector<8xf32>
    %22 = vector.shape_cast %21 : vector<8xf32> to vector<8x1xf32>
    %23 = vector.broadcast %22 : vector<8x1xf32> to vector<8x8xf32>
    %24 = arith.subf %20, %23 : vector<8x8xf32>
    %25 = math.exp %24 : vector<8x8xf32>
    %cst_16 = arith.constant dense<0.000000e+00> : vector<8xf32>
    %26 = vector.multi_reduction <add>, %25, %cst_16 [1] : vector<8x8xf32> to vector<8xf32>
    %27 = vector.shape_cast %26 : vector<8xf32> to vector<8x1xf32>
    %28 = vector.broadcast %27 : vector<8x1xf32> to vector<8x8xf32>
    %29 = arith.divf %25, %28 : vector<8x8xf32>
    %cst_17 = arith.constant dense<0.000000e+00> : vector<8x32xf32>
    %30 = tpu.matmul %29, %19, %cst_17 {dimension_numbers = #tpu.dot_dimension_numbers<[1], [0], [0], [1], [0, 0, 1, 1], [], []>} : vector<8x8xf32>, vector<8x32xf32>, vector<8x32xf32> -> vector<8x32xf32>
    %31 = arith.truncf %30 : vector<8x32xf32> to vector<8x32xbf16>
    %32 = vector.extract_strided_slice %15 {offsets = [0, 0], sizes = [32, 128], strides = [1, 1]} : vector<128x128xbf16> to vector<32x128xbf16>
    %cst_18 = arith.constant dense<0.000000e+00> : vector<8x128xf32>
    %33 = tpu.matmul %31, %32, %cst_18 {dimension_numbers = #tpu.dot_dimension_numbers<[1], [0], [0], [1], [0, 0, 1, 1], [], []>} : vector<8x32xbf16>, vector<32x128xbf16>, vector<8x128xf32> -> vector<8x128xf32>
    %34 = arith.addf %16, %33 : vector<8x128xf32>
    %35 = vector.extract_strided_slice %13 {offsets = [0, 32], sizes = [8, 32], strides = [1, 1]} : vector<8x384xf32> to vector<8x32xf32>
    %36 = vector.extract_strided_slice %13 {offsets = [0, 160], sizes = [8, 32], strides = [1, 1]} : vector<8x384xf32> to vector<8x32xf32>
    %37 = vector.extract_strided_slice %13 {offsets = [0, 288], sizes = [8, 32], strides = [1, 1]} : vector<8x384xf32> to vector<8x32xf32>
    %cst_19 = arith.constant dense<0.000000e+00> : vector<8x8xf32>
    %38 = tpu.matmul %35, %36, %cst_19 {dimension_numbers = #tpu.dot_dimension_numbers<[1], [1], [0], [0], [0, 0, 1, 0], [], []>} : vector<8x32xf32>, vector<8x32xf32>, vector<8x8xf32> -> vector<8x8xf32>
    %cst_20 = arith.constant dense<0xFF800000> : vector<8xf32>
    %39 = vector.multi_reduction <maximumf>, %38, %cst_20 [1] : vector<8x8xf32> to vector<8xf32>
    %40 = vector.shape_cast %39 : vector<8xf32> to vector<8x1xf32>
    %41 = vector.broadcast %40 : vector<8x1xf32> to vector<8x8xf32>
    %42 = arith.subf %38, %41 : vector<8x8xf32>
    %43 = math.exp %42 : vector<8x8xf32>
    %cst_21 = arith.constant dense<0.000000e+00> : vector<8xf32>
    %44 = vector.multi_reduction <add>, %43, %cst_21 [1] : vector<8x8xf32> to vector<8xf32>
    %45 = vector.shape_cast %44 : vector<8xf32> to vector<8x1xf32>
    %46 = vector.broadcast %45 : vector<8x1xf32> to vector<8x8xf32>
    %47 = arith.divf %43, %46 : vector<8x8xf32>
    %cst_22 = arith.constant dense<0.000000e+00> : vector<8x32xf32>
    %48 = tpu.matmul %47, %37, %cst_22 {dimension_numbers = #tpu.dot_dimension_numbers<[1], [0], [0], [1], [0, 0, 1, 1], [], []>} : vector<8x8xf32>, vector<8x32xf32>, vector<8x32xf32> -> vector<8x32xf32>
    %49 = arith.truncf %48 : vector<8x32xf32> to vector<8x32xbf16>
    %50 = vector.extract_strided_slice %15 {offsets = [32, 0], sizes = [32, 128], strides = [1, 1]} : vector<128x128xbf16> to vector<32x128xbf16>
    %cst_23 = arith.constant dense<0.000000e+00> : vector<8x128xf32>
    %51 = tpu.matmul %49, %50, %cst_23 {dimension_numbers = #tpu.dot_dimension_numbers<[1], [0], [0], [1], [0, 0, 1, 1], [], []>} : vector<8x32xbf16>, vector<32x128xbf16>, vector<8x128xf32> -> vector<8x128xf32>
    %52 = arith.addf %34, %51 : vector<8x128xf32>
    %53 = vector.extract_strided_slice %13 {offsets = [0, 64], sizes = [8, 32], strides = [1, 1]} : vector<8x384xf32> to vector<8x32xf32>
    %54 = vector.extract_strided_slice %13 {offsets = [0, 192], sizes = [8, 32], strides = [1, 1]} : vector<8x384xf32> to vector<8x32xf32>
    %55 = vector.extract_strided_slice %13 {offsets = [0, 320], sizes = [8, 32], strides = [1, 1]} : vector<8x384xf32> to vector<8x32xf32>
    %cst_24 = arith.constant dense<0.000000e+00> : vector<8x8xf32>
    %56 = tpu.matmul %53, %54, %cst_24 {dimension_numbers = #tpu.dot_dimension_numbers<[1], [1], [0], [0], [0, 0, 1, 0], [], []>} : vector<8x32xf32>, vector<8x32xf32>, vector<8x8xf32> -> vector<8x8xf32>
    %cst_25 = arith.constant dense<0xFF800000> : vector<8xf32>
    %57 = vector.multi_reduction <maximumf>, %56, %cst_25 [1] : vector<8x8xf32> to vector<8xf32>
    %58 = vector.shape_cast %57 : vector<8xf32> to vector<8x1xf32>
    %59 = vector.broadcast %58 : vector<8x1xf32> to vector<8x8xf32>
    %60 = arith.subf %56, %59 : vector<8x8xf32>
    %61 = math.exp %60 : vector<8x8xf32>
    %cst_26 = arith.constant dense<0.000000e+00> : vector<8xf32>
    %62 = vector.multi_reduction <add>, %61, %cst_26 [1] : vector<8x8xf32> to vector<8xf32>
    %63 = vector.shape_cast %62 : vector<8xf32> to vector<8x1xf32>
    %64 = vector.broadcast %63 : vector<8x1xf32> to vector<8x8xf32>
    %65 = arith.divf %61, %64 : vector<8x8xf32>
    %cst_27 = arith.constant dense<0.000000e+00> : vector<8x32xf32>
    %66 = tpu.matmul %65, %55, %cst_27 {dimension_numbers = #tpu.dot_dimension_numbers<[1], [0], [0], [1], [0, 0, 1, 1], [], []>} : vector<8x8xf32>, vector<8x32xf32>, vector<8x32xf32> -> vector<8x32xf32>
    %67 = arith.truncf %66 : vector<8x32xf32> to vector<8x32xbf16>
    %68 = vector.extract_strided_slice %15 {offsets = [64, 0], sizes = [32, 128], strides = [1, 1]} : vector<128x128xbf16> to vector<32x128xbf16>
    %cst_28 = arith.constant dense<0.000000e+00> : vector<8x128xf32>
    %69 = tpu.matmul %67, %68, %cst_28 {dimension_numbers = #tpu.dot_dimension_numbers<[1], [0], [0], [1], [0, 0, 1, 1], [], []>} : vector<8x32xbf16>, vector<32x128xbf16>, vector<8x128xf32> -> vector<8x128xf32>
    %70 = arith.addf %52, %69 : vector<8x128xf32>
    %71 = vector.extract_strided_slice %13 {offsets = [0, 96], sizes = [8, 32], strides = [1, 1]} : vector<8x384xf32> to vector<8x32xf32>
    %72 = vector.extract_strided_slice %13 {offsets = [0, 224], sizes = [8, 32], strides = [1, 1]} : vector<8x384xf32> to vector<8x32xf32>
    %73 = vector.extract_strided_slice %13 {offsets = [0, 352], sizes = [8, 32], strides = [1, 1]} : vector<8x384xf32> to vector<8x32xf32>
    %cst_29 = arith.constant dense<0.000000e+00> : vector<8x8xf32>
    %74 = tpu.matmul %71, %72, %cst_29 {dimension_numbers = #tpu.dot_dimension_numbers<[1], [1], [0], [0], [0, 0, 1, 0], [], []>} : vector<8x32xf32>, vector<8x32xf32>, vector<8x8xf32> -> vector<8x8xf32>
    %cst_30 = arith.constant dense<0xFF800000> : vector<8xf32>
    %75 = vector.multi_reduction <maximumf>, %74, %cst_30 [1] : vector<8x8xf32> to vector<8xf32>
    %76 = vector.shape_cast %75 : vector<8xf32> to vector<8x1xf32>
    %77 = vector.broadcast %76 : vector<8x1xf32> to vector<8x8xf32>
    %78 = arith.subf %74, %77 : vector<8x8xf32>
    %79 = math.exp %78 : vector<8x8xf32>
    %cst_31 = arith.constant dense<0.000000e+00> : vector<8xf32>
    %80 = vector.multi_reduction <add>, %79, %cst_31 [1] : vector<8x8xf32> to vector<8xf32>
    %81 = vector.shape_cast %80 : vector<8xf32> to vector<8x1xf32>
    %82 = vector.broadcast %81 : vector<8x1xf32> to vector<8x8xf32>
    %83 = arith.divf %79, %82 : vector<8x8xf32>
    %cst_32 = arith.constant dense<0.000000e+00> : vector<8x32xf32>
    %84 = tpu.matmul %83, %73, %cst_32 {dimension_numbers = #tpu.dot_dimension_numbers<[1], [0], [0], [1], [0, 0, 1, 1], [], []>} : vector<8x8xf32>, vector<8x32xf32>, vector<8x32xf32> -> vector<8x32xf32>
    %85 = arith.truncf %84 : vector<8x32xf32> to vector<8x32xbf16>
    %86 = vector.extract_strided_slice %15 {offsets = [96, 0], sizes = [32, 128], strides = [1, 1]} : vector<128x128xbf16> to vector<32x128xbf16>
    %cst_33 = arith.constant dense<0.000000e+00> : vector<8x128xf32>
    %87 = tpu.matmul %85, %86, %cst_33 {dimension_numbers = #tpu.dot_dimension_numbers<[1], [0], [0], [1], [0, 0, 1, 1], [], []>} : vector<8x32xbf16>, vector<32x128xbf16>, vector<8x128xf32> -> vector<8x128xf32>
    %88 = arith.addf %70, %87 : vector<8x128xf32>
    %89 = vector.extract_strided_slice %6 {offsets = [1, 0], sizes = [1, 128], strides = [1, 1]} : vector<8x384xf32> to vector<1x128xf32>
    %90 = vector.broadcast %89 : vector<1x128xf32> to vector<8x128xf32>
    %91 = arith.addf %88, %90 : vector<8x128xf32>
    %92 = arith.addf %4, %91 : vector<8x128xf32>
    %93 = vector.extract_strided_slice %6 {offsets = [2, 0], sizes = [1, 128], strides = [1, 1]} : vector<8x384xf32> to vector<1x128xf32>
    %94 = vector.extract_strided_slice %6 {offsets = [3, 0], sizes = [1, 128], strides = [1, 1]} : vector<8x384xf32> to vector<1x128xf32>
    %cst_34 = arith.constant dense<0.000000e+00> : vector<8xf32>
    %95 = vector.multi_reduction <add>, %92, %cst_34 [1] : vector<8x128xf32> to vector<8xf32>
    %96 = vector.shape_cast %95 : vector<8xf32> to vector<8x1xf32>
    %cst_35 = arith.constant 1.280000e+02 : f32
    %97 = vector.broadcast %cst_35 : f32 to vector<8x1xf32>
    %98 = arith.divf %96, %97 : vector<8x1xf32>
    %99 = vector.broadcast %98 : vector<8x1xf32> to vector<8x128xf32>
    %100 = arith.subf %92, %99 : vector<8x128xf32>
    %101 = arith.mulf %100, %100 : vector<8x128xf32>
    %cst_36 = arith.constant dense<0.000000e+00> : vector<8xf32>
    %102 = vector.multi_reduction <add>, %101, %cst_36 [1] : vector<8x128xf32> to vector<8xf32>
    %103 = vector.shape_cast %102 : vector<8xf32> to vector<8x1xf32>
    %cst_37 = arith.constant 1.280000e+02 : f32
    %104 = vector.broadcast %cst_37 : f32 to vector<8x1xf32>
    %105 = arith.divf %103, %104 : vector<8x1xf32>
    %106 = vector.broadcast %98 : vector<8x1xf32> to vector<8x128xf32>
    %107 = arith.subf %92, %106 : vector<8x128xf32>
    %cst_38 = arith.constant 9.99999974E-6 : f32
    %108 = vector.broadcast %cst_38 : f32 to vector<8x1xf32>
    %109 = arith.addf %105, %108 : vector<8x1xf32>
    %110 = math.rsqrt %109 : vector<8x1xf32>
    %111 = vector.broadcast %110 : vector<8x1xf32> to vector<8x128xf32>
    %112 = arith.mulf %107, %111 : vector<8x128xf32>
    %113 = vector.broadcast %93 : vector<1x128xf32> to vector<8x128xf32>
    %114 = arith.mulf %112, %113 : vector<8x128xf32>
    %115 = vector.broadcast %94 : vector<1x128xf32> to vector<8x128xf32>
    %116 = arith.addf %114, %115 : vector<8x128xf32>
    %117 = arith.truncf %116 : vector<8x128xf32> to vector<8x128xbf16>
    %c0_39 = arith.constant 0 : index
    %c0_40 = arith.constant 0 : index
    %c0_41 = arith.constant 0 : index
    %118 = vector.load %arg6[%c0_39, %c0_40, %c0_41] : memref<1x128x256xbf16, #tpu.memory_space<vmem>>, vector<1x128x256xbf16>
    %119 = vector.shape_cast %118 : vector<1x128x256xbf16> to vector<128x256xbf16>
    %cst_42 = arith.constant dense<0.000000e+00> : vector<8x256xf32>
    %120 = tpu.matmul %117, %119, %cst_42 {dimension_numbers = #tpu.dot_dimension_numbers<[1], [0], [0], [1], [0, 0, 1, 1], [], []>} : vector<8x128xbf16>, vector<128x256xbf16>, vector<8x256xf32> -> vector<8x256xf32>
    %121 = vector.extract_strided_slice %6 {offsets = [4, 0], sizes = [1, 256], strides = [1, 1]} : vector<8x384xf32> to vector<1x256xf32>
    %122 = vector.broadcast %121 : vector<1x256xf32> to vector<8x256xf32>
    %123 = arith.addf %120, %122 : vector<8x256xf32>
    %cst_43 = arith.constant 0.000000e+00 : f32
    %124 = vector.broadcast %cst_43 : f32 to vector<8x256xf32>
    %125 = arith.maximumf %123, %124 : vector<8x256xf32>
    %126 = arith.truncf %125 : vector<8x256xf32> to vector<8x256xbf16>
    %c0_44 = arith.constant 0 : index
    %c0_45 = arith.constant 0 : index
    %c0_46 = arith.constant 0 : index
    %127 = vector.load %arg7[%c0_44, %c0_45, %c0_46] : memref<1x256x128xbf16, #tpu.memory_space<vmem>>, vector<1x256x128xbf16>
    %128 = vector.shape_cast %127 : vector<1x256x128xbf16> to vector<256x128xbf16>
    %cst_47 = arith.constant dense<0.000000e+00> : vector<8x128xf32>
    %129 = tpu.matmul %126, %128, %cst_47 {dimension_numbers = #tpu.dot_dimension_numbers<[1], [0], [0], [1], [0, 0, 1, 1], [], []>} : vector<8x256xbf16>, vector<256x128xbf16>, vector<8x128xf32> -> vector<8x128xf32>
    %130 = vector.extract_strided_slice %6 {offsets = [5, 0], sizes = [1, 128], strides = [1, 1]} : vector<8x384xf32> to vector<1x128xf32>
    %131 = vector.broadcast %130 : vector<1x128xf32> to vector<8x128xf32>
    %132 = arith.addf %129, %131 : vector<8x128xf32>
    %133 = arith.addf %116, %132 : vector<8x128xf32>
    %134 = vector.extract_strided_slice %6 {offsets = [6, 0], sizes = [1, 128], strides = [1, 1]} : vector<8x384xf32> to vector<1x128xf32>
    %135 = vector.extract_strided_slice %6 {offsets = [7, 0], sizes = [1, 128], strides = [1, 1]} : vector<8x384xf32> to vector<1x128xf32>
    %cst_48 = arith.constant dense<0.000000e+00> : vector<8xf32>
    %136 = vector.multi_reduction <add>, %133, %cst_48 [1] : vector<8x128xf32> to vector<8xf32>
    %137 = vector.shape_cast %136 : vector<8xf32> to vector<8x1xf32>
    %cst_49 = arith.constant 1.280000e+02 : f32
    %138 = vector.broadcast %cst_49 : f32 to vector<8x1xf32>
    %139 = arith.divf %137, %138 : vector<8x1xf32>
    %140 = vector.broadcast %139 : vector<8x1xf32> to vector<8x128xf32>
    %141 = arith.subf %133, %140 : vector<8x128xf32>
    %142 = arith.mulf %141, %141 : vector<8x128xf32>
    %cst_50 = arith.constant dense<0.000000e+00> : vector<8xf32>
    %143 = vector.multi_reduction <add>, %142, %cst_50 [1] : vector<8x128xf32> to vector<8xf32>
    %144 = vector.shape_cast %143 : vector<8xf32> to vector<8x1xf32>
    %cst_51 = arith.constant 1.280000e+02 : f32
    %145 = vector.broadcast %cst_51 : f32 to vector<8x1xf32>
    %146 = arith.divf %144, %145 : vector<8x1xf32>
    %147 = vector.broadcast %139 : vector<8x1xf32> to vector<8x128xf32>
    %148 = arith.subf %133, %147 : vector<8x128xf32>
    %cst_52 = arith.constant 9.99999974E-6 : f32
    %149 = vector.broadcast %cst_52 : f32 to vector<8x1xf32>
    %150 = arith.addf %146, %149 : vector<8x1xf32>
    %151 = math.rsqrt %150 : vector<8x1xf32>
    %152 = vector.broadcast %151 : vector<8x1xf32> to vector<8x128xf32>
    %153 = arith.mulf %148, %152 : vector<8x128xf32>
    %154 = vector.broadcast %134 : vector<1x128xf32> to vector<8x128xf32>
    %155 = arith.mulf %153, %154 : vector<8x128xf32>
    %156 = vector.broadcast %135 : vector<1x128xf32> to vector<8x128xf32>
    %157 = arith.addf %155, %156 : vector<8x128xf32>
    %c0_53 = arith.constant 0 : index
    %c0_54 = arith.constant 0 : index
    %158 = vector.load %arg12[%c0_53, %c0_54] : memref<8x128xf32, #tpu.memory_space<vmem>>, vector<8x128xf32>
    tpu.vector_store %arg12[%c0_53, %c0_54], %157 {strides = array<i32>} : memref<8x128xf32, #tpu.memory_space<vmem>>, vector<8x128xf32>,
    %c1_i32 = arith.constant 1 : i32
    %159 = arith.cmpi eq, %arg0, %c1_i32 : i32
    %160 = arith.extui %159 : i1 to i32
    %c0_i32_55 = arith.constant 0 : i32
    %161 = arith.cmpi ne, %160, %c0_i32_55 : i32
    scf.if %161 {
      %162 = arith.truncf %157 : vector<8x128xf32> to vector<8x128xbf16>
      %c0_56 = arith.constant 0 : index
      %c0_57 = arith.constant 0 : index
      %163 = vector.load %arg9[%c0_56, %c0_57] : memref<128x512xbf16, #tpu.memory_space<vmem>>, vector<128x512xbf16>
      %cst_58 = arith.constant dense<0.000000e+00> : vector<8x512xf32>
      %164 = tpu.matmul %162, %163, %cst_58 {dimension_numbers = #tpu.dot_dimension_numbers<[1], [0], [0], [1], [0, 0, 1, 1], [], []>} : vector<8x128xbf16>, vector<128x512xbf16>, vector<8x512xf32> -> vector<8x512xf32>
      %165 = vector.extract_strided_slice %0 {offsets = [1, 0], sizes = [1, 512], strides = [1, 1]} : vector<8x512xf32> to vector<1x512xf32>
      %166 = vector.broadcast %165 : vector<1x512xf32> to vector<8x512xf32>
      %167 = arith.addf %164, %166 : vector<8x512xf32>
      %168 = arith.truncf %167 : vector<8x512xf32> to vector<8x512xbf16>
      %c0_59 = arith.constant 0 : index
      %c0_60 = arith.constant 0 : index
      %169 = vector.load %arg10[%c0_59, %c0_60] : memref<512x256xbf16, #tpu.memory_space<vmem>>, vector<512x256xbf16>
      %cst_61 = arith.constant dense<0.000000e+00> : vector<8x256xf32>
      %170 = tpu.matmul %168, %169, %cst_61 {dimension_numbers = #tpu.dot_dimension_numbers<[1], [0], [0], [1], [0, 0, 1, 1], [], []>} : vector<8x512xbf16>, vector<512x256xbf16>, vector<8x256xf32> -> vector<8x256xf32>
      %171 = vector.extract_strided_slice %0 {offsets = [2, 0], sizes = [1, 256], strides = [1, 1]} : vector<8x512xf32> to vector<1x256xf32>
      %172 = vector.broadcast %171 : vector<1x256xf32> to vector<8x256xf32>
      %173 = arith.addf %170, %172 : vector<8x256xf32>
      %c0_62 = arith.constant 0 : index
      %c0_63 = arith.constant 0 : index
      %174 = vector.load %arg11[%c0_62, %c0_63] : memref<8x256xf32, #tpu.memory_space<vmem>>, vector<8x256xf32>
      tpu.vector_store %arg11[%c0_62, %c0_63], %173 {strides = array<i32>} : memref<8x256xf32, #tpu.memory_space<vmem>>, vector<8x256xf32>,
    } else {
    }
    return
  }
  func.func @transform_0(%arg0: i32) -> (i32, i32) {
    %c0_i32 = arith.constant 0 : i32
    %c0_i32_0 = arith.constant 0 : i32
    %c0_i32_1 = arith.constant 0 : i32
    return %c0_i32, %c0_i32_0 : i32, i32
  }
  func.func @transform_1(%arg0: i32) -> (i32, i32) {
    %c0_i32 = arith.constant 0 : i32
    %c0_i32_0 = arith.constant 0 : i32
    %c0_i32_1 = arith.constant 0 : i32
    return %c0_i32, %c0_i32_0 : i32, i32
  }
  func.func @transform_2(%arg0: i32) -> (i32, i32) {
    %c0_i32 = arith.constant 0 : i32
    %c0_i32_0 = arith.constant 0 : i32
    %c0_i32_1 = arith.constant 0 : i32
    return %c0_i32, %c0_i32_0 : i32, i32
  }
  func.func @transform_3(%arg0: i32) -> (i32, i32, i32) {
    %c0_i32 = arith.constant 0 : i32
    %c0_i32_0 = arith.constant 0 : i32
    %c0_i32_1 = arith.constant 0 : i32
    return %arg0, %c0_i32, %c0_i32_0 : i32, i32, i32
  }
  func.func @transform_4(%arg0: i32) -> (i32, i32, i32) {
    %c0_i32 = arith.constant 0 : i32
    %c0_i32_0 = arith.constant 0 : i32
    %c0_i32_1 = arith.constant 0 : i32
    return %arg0, %c0_i32, %c0_i32_0 : i32, i32, i32
  }
  func.func @transform_5(%arg0: i32) -> (i32, i32, i32) {
    %c0_i32 = arith.constant 0 : i32
    %c0_i32_0 = arith.constant 0 : i32
    %c0_i32_1 = arith.constant 0 : i32
    return %arg0, %c0_i32, %c0_i32_0 : i32, i32, i32
  }
  func.func @transform_6(%arg0: i32) -> (i32, i32, i32) {
    %c0_i32 = arith.constant 0 : i32
    %c0_i32_0 = arith.constant 0 : i32
    %c0_i32_1 = arith.constant 0 : i32
    return %arg0, %c0_i32, %c0_i32_0 : i32, i32, i32
  }
  func.func @transform_7(%arg0: i32) -> (i32, i32, i32) {
    %c0_i32 = arith.constant 0 : i32
    %c0_i32_0 = arith.constant 0 : i32
    %c0_i32_1 = arith.constant 0 : i32
    return %arg0, %c0_i32, %c0_i32_0 : i32, i32, i32
  }
  func.func @transform_8(%arg0: i32) -> (i32, i32) {
    %c0_i32 = arith.constant 0 : i32
    %c0_i32_0 = arith.constant 0 : i32
    %c0_i32_1 = arith.constant 0 : i32
    return %c0_i32, %c0_i32_0 : i32, i32
  }
  func.func @transform_9(%arg0: i32) -> (i32, i32) {
    %c0_i32 = arith.constant 0 : i32
    %c0_i32_0 = arith.constant 0 : i32
    %c0_i32_1 = arith.constant 0 : i32
    return %c0_i32, %c0_i32_0 : i32, i32
  }
  func.func @transform_10(%arg0: i32) -> (i32, i32) {
    %c0_i32 = arith.constant 0 : i32
    %c0_i32_0 = arith.constant 0 : i32
    %c0_i32_1 = arith.constant 0 : i32
    return %c0_i32, %c0_i32_0 : i32, i32
  }
}

</mosaic_0001>

<bundles_post_ra>
// kernel: tpu_custom_call.1
= control target key start
LH: loop header
LB: loop body
LE: loop exit
PB: predicated region body
PF: predicated region fallthrough
CT: control target
= control target key end

     0   :  { %s5077_s0 = inlined_call_operand.hbm [shape: f32[8,64], index: 0, kind: input, shape index: {}]   ;;  %s5078_s1 = inlined_call_operand.hbm [shape: bf16[64,128], index: 1, kind: input, shape index: {}]   ;;  %s5079_s2 = inlined_call_operand.hbm [shape: f32[8,512], index: 2, kind: input, shape index: {}]   ;;  %s5080_s3 = inlined_call_operand.hbm [shape: bf16[2,128,384], index: 3, kind: input, shape index: {}]   ;;  %s5081_s4 = inlined_call_operand.hbm [shape: bf16[2,128,128], index: 4, kind: input, shape index: {}]   ;;  %s5082_s5 = inlined_call_operand.hbm [shape: bf16[2,128,256], index: 5, kind: input, shape index: {}]   ;;  %s5083_s6 = inlined_call_operand.hbm [shape: bf16[2,256,128], index: 6, kind: input, shape index: {}]   ;;  %s5084_s7 = inlined_call_operand.hbm [shape: f32[2,8,384], index: 7, kind: input, shape index: {}]   ;;  %s5085_s8 = inlined_call_operand.hbm [shape: bf16[128,512], index: 8, kind: input, shape index: {}]   ;;  %s5086_s9 = inlined_call_operand.hbm [shape: bf16[512,256], index: 9, kind: input, shape index: {}]   ;;  %s5087_s10 = inlined_call_operand.hbm [shape: f32[8,256], index: 10, kind: output, shape index: {}]  }
   0x1   :  { %5114 = sst [smem:[#allocation34_spill]] %s5078_s1 }
   0x2   :  { %5115 = sst [smem:[#allocation35_spill]] %s5080_s3 }
   0x3   :  { %5116 = sst [smem:[#allocation36_spill]] %s5082_s5 }
   0x4   :  { %5117 = sst [smem:[#allocation37_spill]] %s5085_s8 }
   0x5   :  { %5118 = sst [smem:[#allocation38_spill]] %s5087_s10 }
   0x6   :  { %15 = vsyncpa [#allocation4], 0 }
   0x7   :  { %16 = vsyncpa [#allocation7], 0 }
   0x8   :  { %17 = vsyncpa [#allocation10], 0 }
   0x9   :  { %19 = vsyncpa [#allocation10 + $0x1], 0 }
   0xa   :  { %20 = vsyncpa [#allocation13], 0 }
   0xb   :  { %22 = vsyncpa [#allocation13 + $0x1], 0 }
   0xc   :  { %23 = vsyncpa [#allocation16], 0 }
   0xd   :  { %25 = vsyncpa [#allocation16 + $0x1], 0 }
   0xe   :  { %26 = vsyncpa [#allocation19], 0 }
   0xf   :  { %27 = vsyncpa [#allocation5], 0  ;;  %s4426_s13 = smov 0   ;;  %s4428_s14 = smov 0  }
  0x10   :  { %s4430_s15 = smov 0   ;;  %s4432_s16 = smov 0  }
  0x11 LB: > { %5119 = sst [smem:[#allocation29_spill]] %s4333_s14  ;;  %s4445_s17 = sadd.s32 4294967295, %s4341_s16   ;;  %s4341_s16 = sphi %s4432_s16, %s5160_s16   ;;  %s4337_s15 = sphi %s4430_s15, %s5163_s15   ;;  %s4333_s14 = sphi %s4428_s14, %s5162_s14   ;;  %s4329_s13 = sphi %s4426_s13, %s5161_s13  }
  0x12   : > { %5120 = sst [smem:[#allocation30_spill]] %s4337_s15  ;;  %p116_p0 = scmp.ne.s32.totalorder %s4333_s14, %s4329_s13 }
  0x13   : > { %p5088_p1 = scmp.eq.s32.totalorder %s4445_s17, 0  ;;  %p3186_p2 = scmp.ge.s32.totalorder %s4341_s16, 1 }
  0x14   : > { %p294_p3 = scmp.lt.s32.totalorder %s4341_s16, 3  ;;  %s4343_s20 = smov [#allocation6]  }
  0x15   : > { %p4454_p5 = por %p5088_p1, %p116_p0  ;;  %s317_s21 = sshll.u32 %s4343_s20, 4  ;;  %s318_s21 = int_to_ptr.vmem [resolvable:$true] %s317_s21 }
  0x16   : > { %p4458_p6 = pnand %p3186_p2, %p294_p3  ;;  %s4344_s23 = smov [#allocation17]  }
  0x17   : > { %s5121_s18 = scalar_select %p4454_p5, 1, 0 }
  0x18   : > { %s5123_s19 = scalar_select %p4458_p6, 1, 0 }
  0x19   : > { %5122 = sst [smem:[#allocation31_spill]] %s5121_s18  ;;  %p3615_p7 = pneg %p4458_p6 }
  0x1a   : > { %s341_s24 = sshll.u32 %s4344_s23, 4  ;;  %s5125_s1 = sld [smem:[#allocation34_spill]]  ;;  %s4470_s24 = int_to_ptr.vmem [resolvable:$true] %s341_s24 }
  0x1b   : > { %p4466_p8 = pnand %p3615_p7, %p5088_p1 }
  0x1d   : > { %s5124_s22 = scalar_select %p4466_p8, 1, 0 }
  0x1e   : > { %p4480_p10 = pneg %p4466_p8 }
  0x20   : > { %s3963_s27 = scalar_lea.hbm %s5125_s1, 512 }
  0x21   : > { %p3964_p9 = scmp.ne.s32.totalorder %s5125_s1, %s3963_s27  ;;  %p3970_p13 = scmp.lt.u32.totalorder %s3963_s27, %s5125_s1 }
  0x22   : > { %s5126_s30 = scalar_select %p4480_p10, 1, 0 }
  0x23   : > { %p3966_p11 = pnand %p4480_p10, %p3964_p9 }
  0x25   : > { %p3967_p12 = pneg %p3966_p11 }
  0x27   : > { %p3972_p0 = pnand %p3970_p13, %p3967_p12 }
  0x29   : > { %3975 = shalt.err (!%p3972_p0)
}
  0x2a   : > { %s3976_s13 = scalar_lea.vmem %s318_s21, 512  ;;  %p3984_p4 = scmp.lt.s32.totalorder %s318_s21, %s318_s21 }
  0x2b   : > { %p3977_p2 = scmp.ne.s32.totalorder %s318_s21, %s3976_s13  ;;  %p3985_p1 = scmp.lt.s32.totalorder %s3976_s13, %s3976_s13 }
  0x2d   : > { %p3979_p3 = pnand %p3977_p2, %p4480_p10  ;;  %p3986_p5 = por %p3985_p1, %p3984_p4 }
  0x2f   : > { %p3980_p7 = pneg %p3979_p3 }
  0x31   : > { %p3987_p6 = pnand %p3986_p5, %p3980_p7 }
  0x33   : > { %3990 = shalt.err (!%p3987_p6)
}
  0x34   : > { %s5092_s20 = smov 64   ;;  %s5094_s23 = smov 4  }
  0x35   : > { %3621 = dma.hbm_to_vmem [thread:$0]  (!%p4466_p8), %s5125_s1, 512, %s318_s21, [#allocation7], %s5092_s20, %s5092_s20, %s5094_s23  }
  0x36   : > { %s5127_s8 = sld [smem:[#allocation37_spill]] }
  0x3c   : > { %s3991_s29 = scalar_lea.hbm %s5127_s8, 4096 }
  0x3d   : > { %p3992_p1 = scmp.ne.s32.totalorder %s5127_s8, %s3991_s29  ;;  %p3998_p6 = scmp.lt.u32.totalorder %s3991_s29, %s5127_s8 }
  0x3f   : > { %p3994_p4 = pnand %p3992_p1, %p4480_p10 }
  0x41   : > { %p3995_p5 = pneg %p3994_p4 }
  0x43   : > { %p4000_p9 = pnand %p3998_p6, %p3995_p5 }
  0x45   : > { %4003 = shalt.err (!%p4000_p9)
}
  0x46   : > { %s4004_s21 = scalar_lea.vmem %s4470_s24, 4096  ;;  %p4012_p0 = scmp.lt.s32.totalorder %s4470_s24, %s4470_s24 }
  0x47   : > { %p4005_p11 = scmp.ne.s32.totalorder %s4470_s24, %s4004_s21  ;;  %p4013_p2 = scmp.lt.s32.totalorder %s4004_s21, %s4004_s21 }
  0x49   : > { %p4007_p12 = pnand %p4005_p11, %p4480_p10  ;;  %p4014_p3 = por %p4013_p2, %p4012_p0 }
  0x4b   : > { %p4008_p13 = pneg %p4007_p12 }
  0x4d   : > { %p4015_p7 = pnand %p4014_p3, %p4008_p13 }
  0x4f   : > { %4018 = shalt.err (!%p4015_p7)
}
  0x50   : > { %s4347_s25 = smov 256   ;;  %s4348_s10 = smov 16  }
  0x51   : > { %3627 = dma.hbm_to_vmem [thread:$0]  (!%p4466_p8), %s5127_s8, 4096, %s4470_s24, [#allocation16], %s4347_s25, %s4347_s25, %s4348_s10  }
  0x52   : > { %s4523_s28 = sadd.s32 1, %s4341_s16   ;;  %s103_s11 = sadd.s32 1, %s4337_s15 }
  0x53   : > { %5128 = sst [smem:[#allocation32_spill]] %s4523_s28  ;;  %s100_s29 = ssub.s32 %s4341_s16, %s4523_s28 }
  0x54   : > { %p101_p1 = scmp.eq.s32.totalorder %s100_s29, 0  ;;  %p110_p4 = scmp.ne.s32.totalorder %s4337_s15, %s4333_s14 }
  0x55   : > { %p111_p5 = scmp.eq.s32.totalorder %s4341_s16, 0  ;;  %p3652_p9 = scmp.lt.s32.totalorder %s4341_s16, 2 }
  0x56   : > { %s4532_s12 = scalar_select %p101_p1, %s4337_s15, %s103_s11  }
  0x57   : > { %p112_p6 = por %p111_p5, %p110_p4  ;;  %s4536_s13 = sand.u32 1, %s4341_s16  }
  0x58   : > { %5129 = sst [smem:[#allocation33_spill]] %s4532_s12  ;;  %s4539_s21 = sand.u32 1, %s4337_s15  }
  0x59   : > { %s3575_s26 = smul.u32 192, %s4539_s21  ;;  %p4543_p11 = pnand %p3652_p9, %p112_p6 }
  0x5a   : > { %s3576_s24 = smul.u32 3072, %s4341_s16  ;;  %s5131_s3 = sld [smem:[#allocation35_spill]] }
  0x5b   : > { %s5130_s25 = scalar_select %p4543_p11, 1, 0 }
  0x5c   : > { %s372_s11 = scalar_lea.vmem [#allocation9], %s3575_s26  ;;  %p4559_p13 = pneg %p4543_p11 }
  0x5d   : > { %s379_s20 = sshll.u32 %s372_s11, 4  ;;  %s4552_s20 = int_to_ptr.vmem [resolvable:$true] %s379_s20 }
  0x5e   : > { %s5132_s8 = scalar_select %p4559_p13, 1, 0 }
  0x60   : > { %s4550_s29 = scalar_lea.hbm %s5131_s3, %s3576_s24  ;;  %s4024_s27 = scalar_lea.hbm %s5131_s3, 6144 }
  0x61   : > { %s4019_s1 = scalar_lea.hbm %s4550_s29, 3072  ;;  %p4025_p3 = scmp.lt.u32.totalorder %s4550_s29, %s5131_s3 }
  0x62   : > { %p4020_p12 = scmp.ne.s32.totalorder %s4550_s29, %s4019_s1  ;;  %p4026_p7 = scmp.lt.u32.totalorder %s4024_s27, %s4019_s1 }
  0x63   : > { %p4028_p4 = scmp.lt.u32.totalorder %s4019_s1, %s4550_s29 }
  0x64   : > { %p4022_p0 = pnand %p4559_p13, %p4020_p12  ;;  %p4027_p1 = por %p4026_p7, %p4025_p3 }
  0x66   : > { %p4023_p2 = pneg %p4022_p0  ;;  %p4029_p5 = por %p4028_p4, %p4027_p1 }
  0x68   : > { %p4030_p6 = pnand %p4029_p5, %p4023_p2 }
  0x6a   : > { %4033 = shalt.err (!%p4030_p6)
}
  0x6b   : > { %s4034_s23 = scalar_lea.vmem %s4552_s20, 3072  ;;  %s4349_s24 = smov [#allocation9]  }
  0x6c   : > { %p4035_p9 = scmp.ne.s32.totalorder %s4552_s20, %s4034_s23  ;;  %s4039_s10 = sshll.u32 %s4349_s24, 4  ;;  %s4040_s10 = int_to_ptr.vmem [resolvable:$false] %s4039_s10 }
  0x6d   : > { %s4041_s26 = scalar_lea.vmem %s4040_s10, 6144  ;;  %p4042_p8 = scmp.lt.s32.totalorder %s4552_s20, %s4040_s10 }
  0x6e   : > { %p4037_p12 = pnand %p4035_p9, %p4559_p13  ;;  %p4043_p10 = scmp.lt.s32.totalorder %s4041_s26, %s4034_s23 }
  0x70   : > { %p4038_p0 = pneg %p4037_p12  ;;  %p4044_p3 = por %p4043_p10, %p4042_p8 }
  0x72   : > { %p4045_p7 = pnand %p4044_p3, %p4038_p0 }
  0x74   : > { %4048 = shalt.err (!%p4045_p7)
}
  0x75   : > { %s4350_s1 = smov 192   ;;  %s4351_s27 = smov 12  }
  0x76   : > { %s5133_s11 = scalar_lea.sflag [#allocation10], %s4536_s13  ;;  %s5105_s24 = sshll.u32 %s4539_s21, 7 }
  0x77   : > { %3634 = dma.hbm_to_vmem [thread:$0]  (!%p4543_p11), %s4550_s29, 3072, %s4552_s20, %s5133_s11, %s4350_s1, %s4350_s1, %s4351_s27  }
  0x78   : > { %s3401_s10 = sshll.u32 %s4341_s16, 11  ;;  %s5134_s5 = sld [smem:[#allocation36_spill]] }
  0x79   : > { %s414_s12 = scalar_lea.vmem [#allocation12], %s5105_s24  ;;  %s4598_s20 = scalar_lea.hbm %s5083_s6, %s3401_s10 }
  0x7a   : > { %s421_s15 = sshll.u32 %s414_s12, 4  ;;  %s5109_s29 = scalar_lea.sflag [#allocation13], %s4536_s13  ;;  %s4593_s15 = int_to_ptr.vmem [resolvable:$true] %s421_s15 }
  0x7e   : > { %s4589_s3 = scalar_lea.hbm %s5134_s5, %s3401_s10  ;;  %s4054_s23 = scalar_lea.hbm %s5134_s5, 4096 }
  0x7f   : > { %s4049_s1 = scalar_lea.hbm %s4589_s3, 2048  ;;  %p4055_p1 = scmp.lt.u32.totalorder %s4589_s3, %s5134_s5 }
  0x80   : > { %p4050_p8 = scmp.ne.s32.totalorder %s4589_s3, %s4049_s1  ;;  %p4056_p4 = scmp.lt.u32.totalorder %s4054_s23, %s4049_s1 }
  0x81   : > { %p4058_p6 = scmp.lt.u32.totalorder %s4049_s1, %s4589_s3 }
  0x82   : > { %p4052_p10 = pnand %p4050_p8, %p4559_p13  ;;  %p4057_p5 = por %p4056_p4, %p4055_p1 }
  0x84   : > { %p4053_p2 = pneg %p4052_p10  ;;  %p4059_p9 = por %p4058_p6, %p4057_p5 }
  0x86   : > { %p4060_p12 = pnand %p4059_p9, %p4053_p2 }
  0x88   : > { %4063 = shalt.err (!%p4060_p12)
}
  0x89   : > { %s4064_s18 = scalar_lea.vmem %s4593_s15, 2048  ;;  %s4352_s28 = smov [#allocation12]  }
  0x8a   : > { %p4065_p0 = scmp.ne.s32.totalorder %s4593_s15, %s4064_s18  ;;  %s4069_s12 = sshll.u32 %s4352_s28, 4  ;;  %s4070_s12 = int_to_ptr.vmem [resolvable:$false] %s4069_s12 }
  0x8b   : > { %s4071_s24 = scalar_lea.vmem %s4070_s12, 4096  ;;  %p4072_p8 = scmp.lt.s32.totalorder %s4593_s15, %s4070_s12 }
  0x8c   : > { %p4067_p3 = pnand %p4065_p0, %p4559_p13  ;;  %p4073_p10 = scmp.lt.s32.totalorder %s4071_s24, %s4064_s18 }
  0x8e   : > { %p4068_p7 = pneg %p4067_p3  ;;  %p4074_p1 = por %p4073_p10, %p4072_p8 }
  0x90   : > { %p4075_p4 = pnand %p4074_p1, %p4068_p7 }
  0x92   : > { %4078 = shalt.err (!%p4075_p4)
}
  0x93   : > { %s5110_s10 = smov 128   ;;  %s4354_s1 = smov 8  }
  0x94   : > { %3640 = dma.hbm_to_vmem [thread:$0]  (!%p4543_p11), %s4589_s3, 2048, %s4593_s15, %s5109_s29, %s5110_s10, %s5110_s10, %s4354_s1  }
  0x95   : > { %s5135_s27 = sshll.u32 %s4539_s21, 7  ;;  %s4355_s26 = smov [#allocation3]  }
  0x96   : > { %s435_s11 = scalar_lea.vmem [#allocation14], %s5135_s27  ;;  %s307_s18 = sshll.u32 %s4355_s26, 4  ;;  %s308_s18 = int_to_ptr.vmem [resolvable:$true] %s307_s18 }
  0x97   : > { %s442_s23 = sshll.u32 %s435_s11, 4  ;;  %s4079_s24 = scalar_lea.hbm %s5077_s0, 128  ;;  %s4629_s23 = int_to_ptr.vmem [resolvable:$true] %s442_s23 }
  0x98   : > { %p4080_p2 = scmp.ne.s32.totalorder %s5077_s0, %s4079_s24  ;;  %p5136_p5 = scmp.ne.s32.totalorder %s5126_s30, 0 }
  0x99   : > { %p4086_p12 = scmp.lt.u32.totalorder %s4079_s24, %s5077_s0 }
  0x9a   : > { %p4082_p6 = pnand %p4080_p2, %p5136_p5 }
  0x9c   : > { %p4083_p9 = pneg %p4082_p6 }
  0x9e   : > { %p4088_p0 = pnand %p4086_p12, %p4083_p9 }
  0xa0   : > { %4091 = shalt.err (!%p4088_p0)
}
  0xa1   : > { %s4092_s27 = scalar_lea.vmem %s308_s18, 128  ;;  %p4100_p10 = scmp.lt.s32.totalorder %s308_s18, %s308_s18 }
  0xa2   : > { %p4093_p3 = scmp.ne.s32.totalorder %s308_s18, %s4092_s27  ;;  %p4101_p1 = scmp.lt.s32.totalorder %s4092_s27, %s4092_s27 }
  0xa4   : > { %p4095_p7 = pnand %p4093_p3, %p5136_p5  ;;  %p4102_p4 = por %p4101_p1, %p4100_p10 }
  0xa6   : > { %p4096_p8 = pneg %p4095_p7 }
  0xa8   : > { %p4103_p11 = pnand %p4102_p4, %p4096_p8 }
  0xaa   : > { %4106 = shalt.err (!%p4103_p11)
}
  0xab   : > { %p5137_p2 = scmp.ne.s32.totalorder %s5124_s22, 0  ;;  %s4356_s11 = smov [#allocation8]  }
  0xac   : > { %s331_s26 = sshll.u32 %s4356_s11, 4  ;;  %s4357_s28 = smov [#allocation18]   ;;  %s332_s26 = int_to_ptr.vmem [resolvable:$true] %s331_s26 }
  0xad   : > { %3618 = dma.hbm_to_vmem [thread:$0]  (!%p5137_p2), %s5077_s0, 128, %s308_s18, [#allocation4]  }
  0xae   : > { %s354_s12 = sshll.u32 %s4357_s28, 4  ;;  %s4107_s15 = scalar_lea.hbm %s5079_s2, 512  ;;  %s355_s12 = int_to_ptr.vmem [resolvable:$true] %s354_s12 }
  0xaf   : > { %p4108_p11 = scmp.ne.s32.totalorder %s5079_s2, %s4107_s15  ;;  %p4114_p12 = scmp.lt.u32.totalorder %s4107_s15, %s5079_s2 }
  0xb1   : > { %p4110_p6 = pnand %p4108_p11, %p5136_p5 }
  0xb3   : > { %p4111_p9 = pneg %p4110_p6 }
  0xb5   : > { %p4116_p0 = pnand %p4114_p12, %p4111_p9 }
  0xb7   : > { %4119 = shalt.err (!%p4116_p0)
}
  0xb8   : > { %s4120_s18 = scalar_lea.vmem %s332_s26, 512  ;;  %p4128_p10 = scmp.lt.s32.totalorder %s332_s26, %s332_s26 }
  0xb9   : > { %p4121_p3 = scmp.ne.s32.totalorder %s332_s26, %s4120_s18  ;;  %p4129_p1 = scmp.lt.s32.totalorder %s4120_s18, %s4120_s18 }
  0xbb   : > { %p4123_p7 = pnand %p4121_p3, %p5136_p5  ;;  %p4130_p4 = por %p4129_p1, %p4128_p10 }
  0xbd   : > { %p4124_p8 = pneg %p4123_p7 }
  0xbf   : > { %p4131_p13 = pnand %p4130_p4, %p4124_p8 }
  0xc1   : > { %4134 = shalt.err (!%p4131_p13)
}
  0xc2   : > { %3624 = dma.hbm_to_vmem [thread:$0]  (!%p5137_p2), %s5079_s2, 512, %s332_s26, [#allocation7]  }
  0xc3   : > { %s3194_s10 = sshll.u32 %s4539_s21, 6  ;;  %s4135_s24 = scalar_lea.hbm %s5086_s9, 8192 }
  0xc4   : > { %p4136_p11 = scmp.ne.s32.totalorder %s5086_s9, %s4135_s24  ;;  %p4142_p9 = scmp.lt.u32.totalorder %s4135_s24, %s5086_s9 }
  0xc6   : > { %p4138_p13 = pnand %p4136_p11, %p5136_p5 }
  0xc8   : > { %p4139_p6 = pneg %p4138_p13 }
  0xca   : > { %p4144_p12 = pnand %p4142_p9, %p4139_p6 }
  0xcc   : > { %4147 = shalt.err (!%p4144_p12)
}
  0xcd   : > { %s4148_s26 = scalar_lea.vmem %s355_s12, 8192  ;;  %p4156_p8 = scmp.lt.s32.totalorder %s355_s12, %s355_s12 }
  0xce   : > { %p4149_p0 = scmp.ne.s32.totalorder %s355_s12, %s4148_s26  ;;  %p4157_p10 = scmp.lt.s32.totalorder %s4148_s26, %s4148_s26 }
  0xd0   : > { %p4151_p3 = pnand %p4149_p0, %p5136_p5  ;;  %p4158_p1 = por %p4157_p10, %p4156_p8 }
  0xd2   : > { %p4152_p7 = pneg %p4151_p3 }
  0xd4   : > { %p4159_p4 = pnand %p4158_p1, %p4152_p7 }
  0xd6   : > { %4162 = shalt.err (!%p4159_p4)
}
  0xd7   : > { %s5138_s18 = smov 128   ;;  %s3400_s11 = sshll.u32 %s4341_s16, 10 }
  0xd8   : > { %3630 = dma.hbm_to_vmem [thread:$0]  (!%p5137_p2), %s5086_s9, 8192, %s355_s12, [#allocation19], %s5138_s18, %s5138_s18, %s4354_s1  }
  0xd9   : > { %s4693_s24 = scalar_lea.hbm %s5081_s4, %s3400_s11  ;;  %s393_s22 = scalar_lea.vmem [#allocation11], %s3194_s10 }
  0xda   : > { %s400_s3 = sshll.u32 %s393_s22, 4  ;;  %s4163_s15 = scalar_lea.hbm %s4693_s24, 1024  ;;  %s4695_s3 = int_to_ptr.vmem [resolvable:$true] %s400_s3 }
  0xdb   : > { %p4164_p5 = scmp.ne.s32.totalorder %s4693_s24, %s4163_s15  ;;  %p5139_p11 = scmp.ne.s32.totalorder %s5132_s8, 0 }
  0xdc   : > { %s4168_s27 = scalar_lea.hbm %s5081_s4, 2048  ;;  %p4169_p2 = scmp.lt.u32.totalorder %s4693_s24, %s5081_s4 }
  0xdd   : > { %p4166_p13 = pnand %p4164_p5, %p5139_p11  ;;  %p4170_p9 = scmp.lt.u32.totalorder %s4168_s27, %s4163_s15 }
  0xde   : > { %p4172_p0 = scmp.lt.u32.totalorder %s4163_s15, %s4693_s24 }
  0xdf   : > { %p4167_p6 = pneg %p4166_p13  ;;  %p4171_p12 = por %p4170_p9, %p4169_p2 }
  0xe1   : > { %p4173_p3 = por %p4172_p0, %p4171_p12 }
  0xe3   : > { %p4174_p7 = pnand %p4173_p3, %p4167_p6 }
  0xe5   : > { %4177 = shalt.err (!%p4174_p7)
}
  0xe6   : > { %s4178_s10 = scalar_lea.vmem %s4695_s3, 1024  ;;  %s4358_s18 = smov [#allocation11]  }
  0xe7   : > { %p4179_p8 = scmp.ne.s32.totalorder %s4695_s3, %s4178_s10  ;;  %s4183_s29 = sshll.u32 %s4358_s18, 4  ;;  %s4184_s29 = int_to_ptr.vmem [resolvable:$false] %s4183_s29 }
  0xe8   : > { %s4185_s14 = scalar_lea.vmem %s4184_s29, 2048  ;;  %p4186_p4 = scmp.lt.s32.totalorder %s4695_s3, %s4184_s29 }
  0xe9   : > { %p4181_p10 = pnand %p4179_p8, %p5139_p11  ;;  %p4187_p5 = scmp.lt.s32.totalorder %s4185_s14, %s4178_s10 }
  0xeb   : > { %p4182_p1 = pneg %p4181_p10  ;;  %p4188_p13 = por %p4187_p5, %p4186_p4 }
  0xed   : > { %p4189_p2 = pnand %p4188_p13, %p4182_p1 }
  0xef   : > { %4192 = shalt.err (!%p4189_p2)
}
  0xf0   : > { %p5140_p6 = scmp.ne.s32.totalorder %s5130_s25, 0  ;;  %s5141_s11 = smov 4  }
  0xf1   : > { %s5142_s30 = smov 64   ;;  %s5143_s28 = scalar_lea.sflag [#allocation10], %s4536_s13 }
  0xf2   : > { %3637 = dma.hbm_to_vmem [thread:$0]  (!%p5140_p6), %s4693_s24, 1024, %s4695_s3, %s5143_s28, %s5142_s30, %s5142_s30, %s5141_s11  }
  0xf3   : > { %s4193_s22 = scalar_lea.hbm %s4598_s20, 2048  ;;  %s4198_s12 = scalar_lea.hbm %s5083_s6, 4096 }
  0xf4   : > { %p4194_p9 = scmp.ne.s32.totalorder %s4598_s20, %s4193_s22  ;;  %p4199_p3 = scmp.lt.u32.totalorder %s4598_s20, %s5083_s6 }
  0xf5   : > { %p4200_p7 = scmp.lt.u32.totalorder %s4198_s12, %s4193_s22  ;;  %p4202_p10 = scmp.lt.u32.totalorder %s4193_s22, %s4598_s20 }
  0xf6   : > { %p4196_p12 = pnand %p4194_p9, %p5139_p11 }
  0xf7   : > { %p4201_p8 = por %p4200_p7, %p4199_p3 }
  0xf8   : > { %p4197_p0 = pneg %p4196_p12 }
  0xf9   : > { %p4203_p1 = por %p4202_p10, %p4201_p8 }
  0xfb   : > { %p4204_p4 = pnand %p4203_p1, %p4197_p0 }
  0xfd   : > { %4207 = shalt.err (!%p4204_p4)
}
  0xfe   : > { %s4208_s24 = scalar_lea.vmem %s4629_s23, 2048  ;;  %s4359_s3 = smov [#allocation14]  }
  0xff   : > { %p4209_p5 = scmp.ne.s32.totalorder %s4629_s23, %s4208_s24  ;;  %s4213_s26 = sshll.u32 %s4359_s3, 4  ;;  %s4214_s26 = int_to_ptr.vmem [resolvable:$false] %s4213_s26 }
 0x100   : > { %s4215_s10 = scalar_lea.vmem %s4214_s26, 4096  ;;  %p4216_p9 = scmp.lt.s32.totalorder %s4629_s23, %s4214_s26 }
 0x101   : > { %p4211_p13 = pnand %p4209_p5, %p5139_p11  ;;  %p4217_p12 = scmp.lt.s32.totalorder %s4215_s10, %s4208_s24 }
 0x103   : > { %p4212_p2 = pneg %p4211_p13  ;;  %p4218_p3 = por %p4217_p12, %p4216_p9 }
 0x105   : > { %p4219_p7 = pnand %p4218_p3, %p4212_p2 }
 0x107   : > { %4222 = shalt.err (!%p4219_p7)
}
 0x108   : > { %s5144_s18 = scalar_lea.sflag [#allocation13], %s4536_s13  ;;  %s3577_s29 = smul.u32 24, %s4539_s21 }
 0x109   : > { %3643 = dma.hbm_to_vmem [thread:$0]  (!%p5140_p6), %s4598_s20, 2048, %s4629_s23, %s5144_s18, %s5142_s30, %s5142_s30, %s5141_s11  }
 0x10a   : > { %s3578_s14 = smul.u32 384, %s4341_s16  ;;  %s456_s1 = scalar_lea.vmem [#allocation15], %s3577_s29 }
 0x10b   : > { %s464_s12 = sshll.u32 %s456_s1, 4  ;;  %s453_s27 = scalar_lea.sflag [#allocation16], %s4536_s13  ;;  %s465_s12 = int_to_ptr.vmem [resolvable:$true] %s464_s12 }
 0x10c   : > { %s4754_s15 = scalar_lea.hbm %s5084_s7, %s3578_s14  ;;  %s4228_s20 = scalar_lea.hbm %s5084_s7, 768 }
 0x10d   : > { %s4223_s5 = scalar_lea.hbm %s4754_s15, 384  ;;  %p4229_p1 = scmp.lt.u32.totalorder %s4754_s15, %s5084_s7 }
 0x10e   : > { %p4224_p0 = scmp.ne.s32.totalorder %s4754_s15, %s4223_s5  ;;  %p4230_p4 = scmp.lt.u32.totalorder %s4228_s20, %s4223_s5 }
 0x10f   : > { %p4232_p13 = scmp.lt.u32.totalorder %s4223_s5, %s4754_s15 }
 0x110   : > { %p4226_p8 = pnand %p4224_p0, %p5139_p11  ;;  %p4231_p5 = por %p4230_p4, %p4229_p1 }
 0x112   : > { %p4227_p10 = pneg %p4226_p8  ;;  %p4233_p2 = por %p4232_p13, %p4231_p5 }
 0x114   : > { %p4234_p9 = pnand %p4233_p2, %p4227_p10 }
 0x116   : > { %4237 = shalt.err (!%p4234_p9)
}
 0x117   : > { %s4238_s13 = scalar_lea.vmem %s465_s12, 384  ;;  %s4360_s30 = smov [#allocation15]  }
 0x118   : > { %p4239_p12 = scmp.ne.s32.totalorder %s465_s12, %s4238_s13  ;;  %s4243_s24 = sshll.u32 %s4360_s30, 4  ;;  %s4244_s24 = int_to_ptr.vmem [resolvable:$false] %s4243_s24 }
 0x119   : > { %s4245_s3 = scalar_lea.vmem %s4244_s24, 768  ;;  %p4246_p0 = scmp.lt.s32.totalorder %s465_s12, %s4244_s24 }
 0x11a   : > { %p4241_p3 = pnand %p4239_p12, %p5139_p11  ;;  %p4247_p8 = scmp.lt.s32.totalorder %s4245_s3, %s4238_s13 }
 0x11c   : > { %p4242_p7 = pneg %p4241_p3  ;;  %p4248_p6 = por %p4247_p8, %p4246_p0 }
 0x11e   : > { %p4249_p1 = pnand %p4248_p6, %p4242_p7 }
 0x120   : > { %4252 = shalt.err (!%p4249_p1)
}
 0x121   : > { %p5145_p4 = scmp.ne.s32.totalorder %s5130_s25, 0  ;;  %p5146_p10 = scmp.ne.s32.totalorder %s5123_s19, 0 }
 0x122   : > { %p5147_p5 = scmp.eq.s32.totalorder (!%p5146_p10), %s4445_s17, 0 }
 0x123   : > { %3646 = dma.hbm_to_vmem [thread:$0]  (!%p5145_p4), %s4754_s15, 384, %s465_s12, %s453_s27  }
 0x124   : > { %473 = sbr.rel (%p5146_p10) target bundleno = 4700 (0x125c), region = 60 }
 0x12b   : > { %4296 = dma.done.wait (%p5147_p5), [#allocation4], 128   ;;  %p5148_p11 = pmov %p5147_p5 }
 0x12c   : > { %p5149_p13 = pmov %p5147_p5 }
 0x12d   : > { %4298 = vsyncadd (%p5148_p11), [#allocation4], 4294967168 }
 0x12e   : > { %4300 = dma.done.wait (%p5149_p13), [#allocation7], 1024   ;;  %p5150_p2 = pmov %p5147_p5 }
 0x12f   : > { %s5151_s8 = sld [smem:[#allocation29_spill]]  ;;  %s5152_s25 = sld [smem:[#allocation31_spill]] }
 0x130   : > { %4302 = vsyncadd (%p5150_p2), [#allocation7], 4294966272  ;;  %s487_s26 = sand.u32 1, %s4445_s17  }
 0x131   : > { %s488_s19 = scalar_lea.sflag [#allocation10], %s487_s26 }
 0x135   : > { %s489_s10 = sand.u32 1, %s5151_s8   ;;  %p5153_p6 = scmp.ne.s32.totalorder %s5152_s25, 0 }
 0x136   : > { %s3579_s18 = smul.u32 192, %s489_s10 }
 0x138   : > { %s4786_s29 = scalar_lea.vmem [#allocation9], %s3579_s18 }
 0x139   : > { %4304 = dma.done.wait (%p5153_p6), %s488_s19, 4096  }
 0x13a   : > { %4306 = vsyncadd (%p5153_p6), %s488_s19, 4294963200  ;;  %s3208_s14 = sshll.u32 %s489_s10, 6  ;;  %s3209_s28 = sshll.u32 %s489_s10, 7 }
 0x13b   : > { %s4792_s22 = scalar_lea.vmem [#allocation11], %s3208_s14  ;;  %s506_s15 = scalar_lea.sflag [#allocation13], %s487_s26 }
 0x13c   : > { %s4794_s1 = scalar_lea.vmem [#allocation12], %s3209_s28 }
 0x13d   : > { %4308 = dma.done.wait (%p5153_p6), %s506_s15, 4096  }
 0x13e   : > { %4310 = vsyncadd (%p5153_p6), %s506_s15, 4294963200  ;;  %s3580_s12 = smul.u32 24, %s489_s10  ;;  %s4800_s27 = scalar_lea.vmem [#allocation14], %s3209_s28 }
 0x13f   : > { %s524_s5 = scalar_lea.sflag [#allocation16], %s487_s26 }
 0x140   : > { %s4802_s21 = scalar_lea.vmem [#allocation15], %s3580_s12 }
 0x141   : > { %4312 = dma.done.wait (%p5153_p6), %s524_s5, 384  }
 0x142   : > { %4314 = vsyncadd (%p5153_p6), %s524_s5, 4294966912  ;;  %p5154_p9 = pmov %p5150_p2 }
 0x143   : > { %p5155_p12 = pmov %p5150_p2 }
 0x144   : > { %4316 = dma.done.wait (%p5154_p9), [#allocation16], 4096  }
 0x145   : > { %4318 = vsyncadd (%p5155_p12), [#allocation16], 4294963200  ;;  %p5156_p3 = pmov %p5150_p2 }
 0x146   : > { %p5157_p7 = pmov %p5150_p2 }
 0x147   : > { %4320 = dma.done.wait (%p5156_p3), [#allocation19], 8192  }
 0x148   : > { %4322 = vsyncadd (%p5157_p7), [#allocation19], 4294959104  ;;  %v4816_v0 = vld [vmem:[#allocation8] sm:$0xff]  ;;  %v4818_v1 = vld [vmem:[#allocation8 + $0x8] sm:$0xff]  ;;  %p5158_p0 = scmp.ne.s32.totalorder %s4445_s17, 0 }
 0x149   : > { %v4820_v2 = vld [vmem:[#allocation8 + $0x10] sm:$0xff]  ;;  %v4822_v3 = vld [vmem:[#allocation8 + $0x18] sm:$0xff]  ;;  %v3715_v4 = vld [vmem:[#allocation6] sm:$0xff] (!%p5158_p0)   ;;  %v4361_v5 = vmov (!%p5158_p0), 0.0   ;;  %vm4362_vm0 = vmmov (!%p5158_p0), 0   ;;  %vm634_vm1 = vcmask (!%p5158_p0), 523264   ;;  %v606_v11 = vlaneseq (!%p5158_p0) }
 0x14a   : > { %595 = sbr.rel (%p5158_p0) target bundleno = 564 (0x234), region = 104  ;;  %3467 = vmatprep.subr.bf16.mxu0 (!%p5158_p0), %v4361_v5  ;;  %v3716_v6 = vld [vmem:[#allocation6 + $0x8] sm:$0xff] (!%p5158_p0)   ;;  %3475 = vmatprep.mubr.msk.bf16.mxu0 (!%p5158_p0), %vm4362_vm0, %v4361_v5  ;;  %v3717_v7 = vld [vmem:[#allocation6 + $0x10] sm:$0xff] (!%p5158_p0)   ;;  %v3718_v8 = vld [vmem:[#allocation6 + $0x18] sm:$0xff] (!%p5158_p0)  }
 0x14b   : > { %3468 = vmatpush3.bf16.msra.mxu0 (!%p5158_p0), %v3715_v4  ;;  %v596_v9 = vld [vmem:[#allocation3] sm:$0xff] (!%p5158_p0)  ;;  %v607_v12 = vshrl.u32 (!%p5158_p0), %v606_v11, 7 }
 0x14c   : > { %3469 = vmatprep.subr.bf16.mxu0 (!%p5158_p0), %v4361_v5  ;;  %v597_v10 = vpack.c.bf16 (!%p5158_p0), %v596_v9, %v596_v9 }
 0x14d   : > { %v608_v13 = vsub.s32 (!%p5158_p0), 0, %v607_v12  ;;  %vm681_vm2 = vcmp.lt.s32.totalorder (!%p5158_p0), %v607_v12, 4 }
 0x14f   : > { %3470 = vmatpush3.bf16.msra.mxu0 (!%p5158_p0), %v3716_v6  ;;  %v609_v14 = vrot.slane (!%p5158_p0), %v4816_v0, %v608_v13 }
 0x150   : > { %3471 = vmatprep.subr.bf16.mxu0 (!%p5158_p0), %v4361_v5 }
 0x153   : > { %3472 = vmatpush3.bf16.msra.mxu0 %v3717_v7 }
 0x154   : > { %3473 = vmatprep.subr.bf16.mxu0 %v4361_v5 }
 0x157   : > { %3474 = vmatpush3.bf16.msra.mxu0 %v3718_v8 }
 0x15a   : > { %3476 = vmatmul.mubr.msk.bf16.vlgmr.msra.gmra.mrb[0].mxu0 %vm634_vm1, %v597_v10 }
 0x22d   : > { %v672_v15 = vpop.f32.mrb[0].mxu0 }
 0x22e   : > { %v673_v16 = vadd.f32 %v672_v15, %v609_v14  ;;  %v3477_v17 = vpop.f32.mrb[1].mxu0 }
 0x22f   : > { %v675_v18 = vpop.f32.mrb[2].mxu0 }
 0x230   : > { %v678_v19 = vmax.f32 %v673_v16, 0.0  ;;  %v3478_v20 = vpop.f32.mrb[3].mxu0 }
 0x232   : > { %v684_v21 = vsel %vm681_vm2, %v678_v19, 0.0 }
 0x233   : > { %685 = vst [vmem:[#allocation2] sm:$0xff] %v684_v21 }
 0x234 PF: > { %v3719_v22 = vld [vmem:[%s4786_s29 + $0x4] ss:$12 sps:$4 sm:$0xff]   ;;  %v3721_v23 = vld [vmem:[%s4786_s29] ss:$12 sps:$4 sm:$0xff]   ;;  %v4363_v24 = vmov 0   ;;  %v4364_v25 = vmov 0.0   ;;  %v723_v50 = vlaneseq }
 0x235   : > { %895 = vmatprep.mubr.bf16.mxu0 %v4363_v24  ;;  %3479 = vmatprep.subr.bf16.mxu1 %v4364_v25  ;;  %v3722_v26 = vld [vmem:[%s4786_s29 + $0x1c] ss:$12 sps:$4 sm:$0xff]   ;;  %vm4365_vm3 = vmmov 0   ;;  %v3724_v27 = vld [vmem:[%s4786_s29 + $0x18] ss:$12 sps:$4 sm:$0xff]   ;;  %vm960_vm4 = vcmask 261120  }
 0x236   : > { %863 = vmatprep.subr.bf16.mxu0 %v3719_v22  ;;  %3495 = vmatprep.mubr.msk.bf16.mxu1 %vm4365_vm3, %v4364_v25  ;;  %v3725_v28 = vld [vmem:[%s4786_s29 + $0x34] ss:$12 sps:$4 sm:$0xff]   ;;  %v3727_v29 = vld [vmem:[%s4786_s29 + $0x30] ss:$12 sps:$4 sm:$0xff]   ;;  %v3728_v30 = vld [vmem:[%s4786_s29 + $0x4c] ss:$12 sps:$4 sm:$0xff]  }
 0x237   : > { %864 = vmatpush1.bf16.msra.mxu0 %v3721_v23  ;;  %v3730_v31 = vld [vmem:[%s4786_s29 + $0x48] ss:$12 sps:$4 sm:$0xff]   ;;  %v3731_v33 = vld [vmem:[%s4786_s29 + $0x64] ss:$12 sps:$4 sm:$0xff]   ;;  %v3744_v34 = vld [vmem:[%s4786_s29 + $0x20] ss:$12 sps:$4 sm:$0xff]  }
 0x238   : > { %865 = vmatprep.subr.bf16.mxu0 %v3722_v26  ;;  %v3743_v32 = vld [vmem:[%s4786_s29 + $0x8] ss:$12 sps:$4 sm:$0xff]   ;;  %v3733_v35 = vld [vmem:[%s4786_s29 + $0x60] ss:$12 sps:$4 sm:$0xff]   ;;  %v3736_v37 = vld [vmem:[%s4786_s29 + $0x78] ss:$12 sps:$4 sm:$0xff]  }
 0x239   : > { %3480 = vmatpush3.bf16.msra.mxu1 %v3743_v32  ;;  %v3734_v36 = vld [vmem:[%s4786_s29 + $0x7c] ss:$12 sps:$4 sm:$0xff]   ;;  %v3745_v38 = vld [vmem:[%s4786_s29 + $0x38] ss:$12 sps:$4 sm:$0xff]   ;;  %v3737_v39 = vld [vmem:[%s4786_s29 + $0x94] ss:$12 sps:$4 sm:$0xff]  }
 0x23a   : > { %3481 = vmatprep.subr.bf16.mxu1 %v4364_v25  ;;  %v3746_v40 = vld [vmem:[%s4786_s29 + $0x50] ss:$12 sps:$4 sm:$0xff]   ;;  %v3740_v42 = vld [vmem:[%s4786_s29 + $0xac] ss:$12 sps:$4 sm:$0xff]   ;;  %v3747_v43 = vld [vmem:[%s4786_s29 + $0x68] ss:$12 sps:$4 sm:$0xff]  }
 0x23b   : > { %866 = vmatpush1.bf16.msra.mxu0 %v3724_v27  ;;  %v3739_v41 = vld [vmem:[%s4786_s29 + $0x90] ss:$12 sps:$4 sm:$0xff]   ;;  %v3742_v44 = vld [vmem:[%s4786_s29 + $0xa8] ss:$12 sps:$4 sm:$0xff]   ;;  %v3748_v46 = vld [vmem:[%s4786_s29 + $0x80] ss:$12 sps:$4 sm:$0xff]  }
 0x23c   : > { %867 = vmatprep.subr.bf16.mxu0 %v3725_v28  ;;  %v4855_v45 = vld [vmem:[#allocation2] sm:$0xff]  ;;  %v3749_v48 = vld [vmem:[%s4786_s29 + $0x98] ss:$12 sps:$4 sm:$0xff]   ;;  %v4872_v51 = vshrl.u32 %v723_v50, 7  ;;  %s4366_s16 = smov 96   ;;  %vm1037_vm5 = vcmask 64512  }
 0x23d   : > { %3482 = vmatpush3.bf16.msra.mxu1 %v3744_v34  ;;  %v690_v47 = vpack.c.bf16 %v4855_v45, %v4855_v45  ;;  %v3750_v49 = vld [vmem:[%s4786_s29 + $0xb0] ss:$12 sps:$4 sm:$0xff]   ;;  %v4876_v53 = vld [vmem:[%s4802_s21 + $0x8] sm:$0xff]  ;;  %s4367_s20 = smov 64   ;;  %s4368_s23 = smov 32  }
 0x23e   : > { %3483 = vmatprep.subr.bf16.mxu1 %v4364_v25  ;;  %v725_v52 = vsub.s32 0, %v4872_v51  ;;  %v4879_v54 = vld [vmem:[%s4802_s21] sm:$0xff]  ;;  %v689_v62 = vld [vmem:[%s4802_s21 + $0x10] sm:$0xff]  ;;  %p3299_p8 = scmp.ne.s32.totalorder %s4445_s17, 1 }
 0x23f   : > { %868 = vmatpush1.bf16.msra.mxu0 %v3727_v29  ;;  %v3754_v34 = vld [vmem:[%s4792_s22 + $0x18] sm:$0xff]  }
 0x240   : > { %869 = vmatprep.subr.bf16.mxu0 %v3728_v30  ;;  %v730_v55 = vrot.slane %v4876_v53, %v725_v52  ;;  %v726_v57 = vrot.slane %v4879_v54, %v725_v52  ;;  %v734_v4 = vrot.slane %v689_v62, %v725_v52 }
 0x241   : > { %3484 = vmatpush3.bf16.msra.mxu1 %v3745_v38  ;;  %v3751_v38 = vld [vmem:[%s4792_s22] sm:$0xff]  }
 0x242   : > { %3485 = vmatprep.subr.bf16.mxu1 %v4364_v25 }
 0x243   : > { %870 = vmatpush1.bf16.msra.mxu0 %v3730_v31 }
 0x244   : > { %871 = vmatprep.subr.bf16.mxu0 %v3731_v33  ;;  %v3753_v33 = vld [vmem:[%s4792_s22 + $0x10] sm:$0xff]  }
 0x245   : > { %3486 = vmatpush3.bf16.msra.mxu1 %v3746_v40  ;;  %v3752_v40 = vld [vmem:[%s4792_s22 + $0x8] sm:$0xff]  }
 0x246   : > { %3487 = vmatprep.subr.bf16.mxu1 %v4364_v25 }
 0x247   : > { %872 = vmatpush1.bf16.msra.mxu0 %v3733_v35 }
 0x248   : > { %873 = vmatprep.subr.bf16.mxu0 %v3734_v36 }
 0x249   : > { %3488 = vmatpush3.bf16.msra.mxu1 %v3747_v43 }
 0x24a   : > { %3489 = vmatprep.subr.bf16.mxu1 %v4364_v25 }
 0x24b   : > { %874 = vmatpush1.bf16.msra.mxu0 %v3736_v37 }
 0x24c   : > { %875 = vmatprep.subr.bf16.mxu0 %v3737_v39 }
 0x24d   : > { %3490 = vmatpush3.bf16.msra.mxu1 %v3748_v46 }
 0x24e   : > { %3491 = vmatprep.subr.bf16.mxu1 %v4364_v25 }
 0x24f   : > { %876 = vmatpush1.bf16.msra.mxu0 %v3739_v41 }
 0x250   : > { %877 = vmatprep.subr.bf16.mxu0 %v3740_v42 }
 0x251   : > { %3492 = vmatpush3.bf16.msra.mxu1 %v3749_v48 }
 0x252   : > { %3493 = vmatprep.subr.bf16.mxu1 %v4364_v25 }
 0x253   : > { %878 = vmatpush1.bf16.msra.mxu0 %v3742_v44 }
 0x254   : > { %3509 = vmatprep.subr.mxu0 %v4364_v25 }
 0x255   : > { %3494 = vmatpush3.bf16.msra.mxu1 %v3750_v49 }
 0x256   : > { %896 = vmatmul.mubr.bf16.vlgmr.msra.gmra.mrb[0].mxu0 %v690_v47  ;;  %3499 = vmatprep.subr.mxu1 %v4364_v25 }
 0x257   : > { %3511 = vmatprep.mubr.msk.f32.mxu0 %vm4365_vm3, %v4364_v25 }
 0x258   : > { %3496 = vmatmul.mubr.bf16.vlgmr.msra.gmra.mrb[0].mxu1 %v690_v47 }
 0x259   : > { %3501 = vmatprep.mubr.msk.f32.mxu1 %vm4365_vm3, %v4364_v25 }
 0x329   : > { %v897_v56 = vpop.f32.mrb[0].mxu0 }
 0x32a   : > { %v899_v58 = vpop.f32.mrb[1].mxu0  ;;  %v4886_v63 = vadd.f32 %v897_v56, %v726_v57 }
 0x32b   : > { %v900_v59 = vadd.f32 %v899_v58, %v730_v55  ;;  %v901_v60 = vpop.f32.mrb[2].mxu0  ;;  %v938_v5 = vpop.f32.mrb[0].mxu1 }
 0x32c   : > { %v902_v61 = vpop.f32.mrb[3].mxu0  ;;  %v4895_v6 = vadd.f32 %v938_v5, %v734_v4  ;;  %v3497_v7 = vpop.f32.mrb[1].mxu1 }
 0x32d   : > { %1125 = vrot.lane.b32.xlu0 %v900_v59, %s4366_s16  ;;  %3500 = vmatpush3.xpose.msk.msra.mxu1 %vm960_vm4, %v900_v59  ;;  %v941_v8 = vpop.f32.mrb[2].mxu1 }
 0x32e   : > { %3504 = vmatprep.subr.mxu1 %v4364_v25  ;;  %v3498_v9 = vpop.f32.mrb[3].mxu1 }
 0x330   : > { %3502 = vmatmul.mubr.msk.f32.vlgmr.msra.gmra.mrb[4].mxu1 %vm960_vm4, %v4886_v63 }
 0x331   : > { %1123 = vrot.lane.b32.xlu0 %v4886_v63, %s4366_s16  ;;  %3506 = vmatprep.mubr.msk.f32.mxu1 %vm4365_vm3, %v4364_v25 }
 0x332   : > { %3505 = vmatpush3.msra.mxu1 %v4895_v6 }
 0x333   : > { %3514 = vmatprep.subr.mxu1 %v4364_v25 }
 0x39f   : > { %v1126_v10 = vpop.permute.xlu0 %1125 }
 0x3a0   : > { %3510 = vmatpush3.xpose.msk.msra.mxu0 %vm960_vm4, %v1126_v10 }
 0x3a1   : > { %3519 = vmatprep.subr.bf16.mxu0 %v4364_v25 }
 0x3a3   : > { %v1124_v11 = vpop.permute.xlu0 %1123 }
 0x3a4   : > { %3512 = vmatmul.mubr.msk.f32.vlgmr.msra.gmra.mrb[4].mxu0 %vm960_vm4, %v1124_v11 }
 0x3a5   : > { %3523 = vmatprep.mubr.msk.bf16.mxu0 %vm4365_vm3, %v4364_v25  ;;  %3520 = vmatpush3.bf16.msra.mxu0 %v3753_v33 }
 0x3a6   : > { %3521 = vmatprep.subr.bf16.mxu0 %v4364_v25 }
 0x3a9   : > { %3522 = vmatpush3.bf16.msra.mxu0 %v3754_v34 }
 0x3aa   : > { %3535 = vmatprep.subr.mxu0 %v4364_v25 }
 0x403   : > { %v1033_v12 = vpop.f32.mrb[4].mxu1 }
 0x404   : > { %v3503_v13 = vpop.f32.mrb[5].mxu1  ;;  %v1038_v14 = vsel %vm1037_vm5, %v1033_v12, -inf }
 0x405   : > { %1039 = vmax.xlane.f32.xlu1 %v1038_v14  ;;  %v3755_v13 = vld [vmem:[%s4792_s22 + $0x20] sm:$0xff]  }
 0x477   : > { %v1197_v15 = vpop.f32.mrb[4].mxu0 }
 0x478   : > { %v3513_v16 = vpop.f32.mrb[5].mxu0  ;;  %v1201_v17 = vsel %vm1037_vm5, %v1197_v15, -inf }
 0x479   : > { %1202 = vmax.xlane.f32.xlu1 %v1201_v17 }
 0x492   : > { %v1040_v18 = vpop.xlane.xlu1 %1039 }
 0x493   : > { %v1041_v19 = vsub.f32 %v1033_v12, %v1040_v18  ;;  %v3756_v18 = vld [vmem:[%s4792_s22 + $0x28] sm:$0xff]  }
 0x495   : > { %v1042_v20 = vmul.f32 1.442695, %v1041_v19 }
 0x497   : > { %3799 = vpow2.f32 %v1042_v20 }
 0x4a1   : > { %v3800_v21 = vpop.eup %3799 }
 0x4a2   : > { %v1044_v22 = vsel %vm1037_vm5, %v3800_v21, 0.0 }
 0x4a3   : > { %1045 = vadd.xlane.f32.xlu0 %v1044_v22 }
 0x4b9   : > { %1489 = vrot.lane.b32.xlu0 %v4895_v6, %s4367_s20 }
 0x4bd   : > { %1624 = vrot.lane.b32.xlu0 %v900_v59, %s4368_s23 }
 0x506   : > { %v1203_v23 = vpop.xlane.xlu1 %1202 }
 0x507   : > { %v1204_v26 = vsub.f32 %v1197_v15, %v1203_v23 }
 0x509   : > { %v1205_v27 = vmul.f32 1.442695, %v1204_v26 }
 0x50b   : > { %3801 = vpow2.f32 %v1205_v27 }
 0x515   : > { %v3802_v28 = vpop.eup %3801 }
 0x516   : > { %v1207_v29 = vsel %vm1037_vm5, %v3802_v28, 0.0 }
 0x517   : > { %1208 = vadd.xlane.f32.xlu1 %v1207_v29 }
 0x528   : > { %1213 = vrot.lane.b32.xlu1 %v4895_v6, %s4366_s16 }
 0x52c   : > { %1402 = vrot.lane.b32.xlu1 %v900_v59, %s4367_s20 }
 0x530   : > { %v1046_v30 = vpop.xlane.xlu0 %1045  ;;  %1400 = vrot.lane.b32.xlu1 %v4886_v63, %s4367_s20 }
 0x531   : > { %3803 = vrcp.f32 %v1046_v30 }
 0x534   : > { %v1490_v44 = vpop.permute.xlu0 %1489 }
 0x538   : > { %v1625_v14 = vpop.permute.xlu0 %1624 }
 0x53b   : > { %v3804_v31 = vpop.eup %3803 }
 0x53c   : > { %v1048_v32 = vmul.f32 %v3804_v31, %v3800_v21 }
 0x53e   : > { %3507 = vmatmul.mubr.msk.f32.vlgmr.msra.gmra.mrb[6].mxu1 %vm1037_vm5, %v1048_v32  ;;  %v3757_v32 = vld [vmem:[%s4792_s22 + $0x30] sm:$0xff]  }
 0x53f   : > { %3516 = vmatprep.mubr.msk.f32.mxu1 %vm4365_vm3, %v4364_v25 }
 0x5a4   : > { %v1209_v35 = vpop.xlane.xlu1 %1208 }
 0x5a5   : > { %3805 = vrcp.f32 %v1209_v35 }
 0x5a8   : > { %v1214_v36 = vpop.permute.xlu1 %1213 }
 0x5a9   : > { %3515 = vmatpush3.msra.mxu1 %v1214_v36 }
 0x5aa   : > { %3527 = vmatprep.subr.bf16.mxu1 %v4364_v25 }
 0x5ac   : > { %v1403_v49 = vpop.permute.xlu1 %1402 }
 0x5af   : > { %v3806_v37 = vpop.eup %3805 }
 0x5b0   : > { %v1211_v39 = vmul.f32 %v3806_v37, %v3802_v28  ;;  %v1401_v50 = vpop.permute.xlu1 %1400 }
 0x5b2   : > { %3517 = vmatmul.mubr.msk.f32.vlgmr.msra.gmra.mrb[8].mxu1 %vm1037_vm5, %v1211_v39 }
 0x5b3   : > { %3528 = vmatpush3.bf16.msra.mxu1 %v3751_v38  ;;  %3531 = vmatprep.mubr.msk.bf16.mxu1 %vm4365_vm3, %v4364_v25 }
 0x5b4   : > { %3529 = vmatprep.subr.bf16.mxu1 %v4364_v25 }
 0x5b7   : > { %3530 = vmatpush3.bf16.msra.mxu1 %v3752_v40 }
 0x5b8   : > { %3540 = vmatprep.subr.mxu1 %v4364_v25 }
 0x611   : > { %v1118_v41 = vpop.f32.mrb[6].mxu1 }
 0x612   : > { %v1122_v42 = vpack.c.bf16 %v1118_v41, %v1118_v41  ;;  %v3508_v43 = vpop.f32.mrb[7].mxu1 }
 0x614   : > { %3532 = vmatmul.mubr.msk.bf16.vlgmr.msra.gmra.mrb[12].mxu1 %vm960_vm4, %v1122_v42 }
 0x615   : > { %3541 = vmatpush3.msra.mxu1 %v1490_v44  ;;  %3542 = vmatprep.mubr.msk.f32.mxu1 %vm4365_vm3, %v4364_v25  ;;  %v4970_v44 = vsub.s32 1, %v4872_v51 }
 0x616   : > { %3553 = vmatprep.subr.mxu1 %v4364_v25 }
 0x685   : > { %v1285_v46 = vpop.f32.mrb[8].mxu1 }
 0x686   : > { %v1289_v47 = vpack.c.bf16 %v1285_v46, %v1285_v46  ;;  %v3518_v48 = vpop.f32.mrb[9].mxu1  ;;  %v1847_v46 = vrot.slane %v4879_v54, %v4970_v44 }
 0x688   : > { %3524 = vmatmul.mubr.msk.bf16.vlgmr.msra.gmra.mrb[8].mxu0 %vm960_vm4, %v1289_v47 }
 0x689   : > { %3536 = vmatpush3.xpose.msk.msra.mxu0 %vm960_vm4, %v1403_v49  ;;  %3537 = vmatprep.mubr.msk.f32.mxu0 %vm4365_vm3, %v4364_v25 }
 0x68a   : > { %3545 = vmatprep.subr.bf16.mxu0 %v4364_v25 }
 0x690   : > { %3538 = vmatmul.mubr.msk.f32.vlgmr.msra.gmra.mrb[6].mxu0 %vm960_vm4, %v1401_v50 }
 0x691   : > { %3549 = vmatprep.mubr.msk.bf16.mxu0 %vm4365_vm3, %v4364_v25  ;;  %3546 = vmatpush3.bf16.msra.mxu0 %v3755_v13  ;;  %v3779_v13 = vld [vmem:[%s4794_s1 + $0x64] ss:$8 sps:$4 sm:$0xff]  }
 0x692   : > { %3547 = vmatprep.subr.bf16.mxu0 %v4364_v25 }
 0x695   : > { %3548 = vmatpush3.bf16.msra.mxu0 %v3756_v18  ;;  %v3785_v18 = vld [vmem:[%s4800_s27 + $0x48] sm:$0xff]  }
 0x696   : > { %3563 = vmatprep.subr.bf16.mxu0 %v4364_v25 }
 0x6e7   : > { %v1394_v52 = vpop.f32.mrb[12].mxu1 }
 0x6e8   : > { %v3533_v55 = vpop.f32.mrb[13].mxu1 }
 0x6e9   : > { %v1397_v56 = vpop.f32.mrb[14].mxu1 }
 0x6ea   : > { %v3534_v57 = vpop.f32.mrb[15].mxu1  ;;  %v3759_v56 = vld [vmem:[%s4794_s1] ss:$8 sps:$4 sm:$0xff]  }
 0x6eb   : > { %v3761_v57 = vld [vmem:[%s4794_s1 + $0x4] ss:$8 sps:$4 sm:$0xff]  }
 0x75b   : > { %v1339_v58 = vpop.f32.mrb[8].mxu0 }
 0x75c   : > { %v1395_v59 = vadd.f32 %v1394_v52, %v1339_v58  ;;  %v3525_v60 = vpop.f32.mrb[9].mxu0  ;;  %v3764_v58 = vld [vmem:[%s4794_s1 + $0x14] ss:$8 sps:$4 sm:$0xff]  }
 0x75d   : > { %v1342_v61 = vpop.f32.mrb[10].mxu0  ;;  %v3767_v60 = vld [vmem:[%s4794_s1 + $0x24] ss:$8 sps:$4 sm:$0xff]  }
 0x75e   : > { %v3526_v62 = vpop.f32.mrb[11].mxu0  ;;  %v3765_v61 = vld [vmem:[%s4794_s1 + $0x20] ss:$8 sps:$4 sm:$0xff]  }
 0x763   : > { %v1474_v4 = vpop.f32.mrb[6].mxu0 }
 0x764   : > { %v3539_v5 = vpop.f32.mrb[7].mxu0  ;;  %v1478_v7 = vsel %vm1037_vm5, %v1474_v4, -inf }
 0x765   : > { %1479 = vmax.xlane.f32.xlu1 %v1478_v7  ;;  %v3770_v7 = vld [vmem:[%s4794_s1 + $0x34] ss:$8 sps:$4 sm:$0xff]  }
 0x7f2   : > { %v1480_v8 = vpop.xlane.xlu1 %1479 }
 0x7f3   : > { %v1481_v9 = vsub.f32 %v1474_v4, %v1480_v8  ;;  %v3768_v8 = vld [vmem:[%s4794_s1 + $0x30] ss:$8 sps:$4 sm:$0xff]  }
 0x7f5   : > { %v1482_v10 = vmul.f32 1.442695, %v1481_v9  ;;  %v3773_v9 = vld [vmem:[%s4794_s1 + $0x44] ss:$8 sps:$4 sm:$0xff]  }
 0x7f7   : > { %3807 = vpow2.f32 %v1482_v10  ;;  %v3771_v10 = vld [vmem:[%s4794_s1 + $0x40] ss:$8 sps:$4 sm:$0xff]  }
 0x801   : > { %v3808_v11 = vpop.eup %3807 }
 0x802   : > { %v1484_v12 = vsel %vm1037_vm5, %v3808_v11, 0.0 }
 0x803   : > { %1485 = vadd.xlane.f32.xlu0 %v1484_v12  ;;  %v3774_v12 = vld [vmem:[%s4794_s1 + $0x50] ss:$8 sps:$4 sm:$0xff]  }
 0x819   : > { %1622 = vrot.lane.b32.xlu0 %v4886_v63, %s4368_s23 }
 0x890   : > { %v1486_v15 = vpop.xlane.xlu0 %1485 }
 0x891   : > { %3809 = vrcp.f32 %v1486_v15  ;;  %v3782_v15 = vld [vmem:[%s4794_s1 + $0x74] ss:$8 sps:$4 sm:$0xff]  }
 0x894   : > { %v1623_v63 = vpop.permute.xlu0 %1622 }
 0x89b   : > { %v3810_v16 = vpop.eup %3809 }
 0x89c   : > { %v1488_v17 = vmul.f32 %v3810_v16, %v3808_v11  ;;  %v3776_v11 = vld [vmem:[%s4794_s1 + $0x54] ss:$8 sps:$4 sm:$0xff]   ;;  %v3780_v16 = vld [vmem:[%s4794_s1 + $0x70] ss:$8 sps:$4 sm:$0xff]  }
 0x89e   : > { %3543 = vmatmul.mubr.msk.f32.vlgmr.msra.gmra.mrb[10].mxu1 %vm1037_vm5, %v1488_v17  ;;  %v3783_v17 = vld [vmem:[%s4800_s27 + $0x40] sm:$0xff]  }
 0x89f   : > { %3554 = vmatpush3.xpose.msk.msra.mxu1 %vm960_vm4, %v1625_v14  ;;  %3555 = vmatprep.mubr.msk.f32.mxu1 %vm4365_vm3, %v4364_v25  ;;  %v3777_v14 = vld [vmem:[%s4794_s1 + $0x60] ss:$8 sps:$4 sm:$0xff]  }
 0x8a0   : > { %3558 = vmatprep.subr.mxu1 %v4364_v25 }
 0x8a2   : > { %3556 = vmatmul.mubr.msk.f32.vlgmr.msra.gmra.mrb[16].mxu1 %vm960_vm4, %v1623_v63  ;;  %v3784_v63 = vld [vmem:[%s4800_s27] sm:$0xff]  }
 0x8a3   : > { %3560 = vmatprep.mubr.msk.f32.mxu1 %vm4365_vm3, %v4364_v25 }
 0x971   : > { %v1561_v19 = vpop.f32.mrb[10].mxu1 }
 0x972   : > { %v1565_v20 = vpack.c.bf16 %v1561_v19, %v1561_v19  ;;  %v3544_v21 = vpop.f32.mrb[11].mxu1  ;;  %v3786_v19 = vld [vmem:[%s4800_s27 + $0x8] sm:$0xff]  }
 0x973   : > { %v3788_v21 = vld [vmem:[%s4800_s27 + $0x10] sm:$0xff]  }
 0x974   : > { %3550 = vmatmul.mubr.msk.bf16.vlgmr.msra.gmra.mrb[12].mxu0 %vm960_vm4, %v1565_v20  ;;  %v3787_v20 = vld [vmem:[%s4800_s27 + $0x50] sm:$0xff]  }
 0x975   : > { %v1696_v22 = vpop.f32.mrb[16].mxu1  ;;  %3567 = vmatprep.mubr.msk.bf16.mxu0 %vm4365_vm3, %v4364_v25  ;;  %3564 = vmatpush3.bf16.msra.mxu0 %v3757_v32 }
 0x976   : > { %v3557_v23 = vpop.f32.mrb[17].mxu1  ;;  %v1700_v26 = vsel %vm1037_vm5, %v1696_v22, -inf  ;;  %3565 = vmatprep.subr.bf16.mxu0 %v4364_v25 }
 0x977   : > { %1701 = vmax.xlane.f32.xlu0 %v1700_v26  ;;  %v3790_v23 = vld [vmem:[%s4800_s27 + $0x18] sm:$0xff]   ;;  %v3791_v26 = vld [vmem:[%s4800_s27 + $0x60] sm:$0xff]  }
 0xa04   : > { %v1702_v27 = vpop.xlane.xlu0 %1701 }
 0xa05   : > { %v1703_v28 = vsub.f32 %v1696_v22, %v1702_v27  ;;  %v3789_v22 = vld [vmem:[%s4800_s27 + $0x58] sm:$0xff]   ;;  %v3792_v27 = vld [vmem:[%s4800_s27 + $0x20] sm:$0xff]  }
 0xa07   : > { %v1704_v29 = vmul.f32 1.442695, %v1703_v28  ;;  %v3793_v28 = vld [vmem:[%s4800_s27 + $0x68] sm:$0xff]  }
 0xa09   : > { %3811 = vpow2.f32 %v1704_v29  ;;  %v3794_v29 = vld [vmem:[%s4800_s27 + $0x28] sm:$0xff]  }
 0xa13   : > { %v3812_v30 = vpop.eup %3811 }
 0xa14   : > { %v1706_v31 = vsel %vm1037_vm5, %v3812_v30, 0.0 }
 0xa15   : > { %1707 = vadd.xlane.f32.xlu1 %v1706_v31 }
 0xa26   : > { %1711 = vrot.lane.b32.xlu1 %v4895_v6, %s4368_s23  ;;  %v3758_v6 = vld [vmem:[%s4792_s22 + $0x38] sm:$0xff]  }
 0xa27   : > { %3566 = vmatpush3.bf16.msra.mxu0 %v3758_v6  ;;  %v3795_v6 = vld [vmem:[%s4800_s27 + $0x70] sm:$0xff]  }
 0xa28   : > { %3445 = vmatprep.subr.bf16.mxu0 %v3783_v17  ;;  %v2208_v17 = vsub.s32 6, %v4872_v51 }
 0xa47   : > { %v1615_v33 = vpop.f32.mrb[12].mxu0 }
 0xa48   : > { %v1621_v34 = vadd.f32 %v1615_v33, %v1395_v59  ;;  %v3551_v35 = vpop.f32.mrb[13].mxu0  ;;  %v3762_v59 = vld [vmem:[%s4794_s1 + $0x10] ss:$8 sps:$4 sm:$0xff]   ;;  %v5004_v33 = vsub.s32 2, %v4872_v51 }
 0xa49   : > { %v1618_v36 = vpop.f32.mrb[14].mxu0 }
 0xa4a   : > { %v3552_v37 = vpop.f32.mrb[15].mxu0  ;;  %v1865_v35 = vrot.slane %v4879_v54, %v5004_v33 }
 0xaa2   : > { %v1708_v38 = vpop.xlane.xlu1 %1707 }
 0xaa3   : > { %3813 = vrcp.f32 %v1708_v38 }
 0xaa6   : > { %v1712_v39 = vpop.permute.xlu1 %1711 }
 0xaa7   : > { %3559 = vmatpush3.msra.mxu1 %v1712_v39 }
 0xaa8   : > { %1977 = vmatprep.subr.bf16.mxu1 %v3761_v57 }
 0xaad   : > { %v3814_v40 = vpop.eup %3813 }
 0xaae   : > { %v1710_v41 = vmul.f32 %v3814_v40, %v3812_v30 }
 0xab0   : > { %3561 = vmatmul.mubr.msk.f32.vlgmr.msra.gmra.mrb[18].mxu1 %vm1037_vm5, %v1710_v41 }
 0xab1   : > { %2009 = vmatprep.mubr.bf16.mxu1 %v4363_v24  ;;  %1978 = vmatpush1.bf16.msra.mxu1 %v3759_v56 }
 0xab2   : > { %1979 = vmatprep.subr.bf16.mxu1 %v3764_v58 }
 0xab5   : > { %1980 = vmatpush1.bf16.msra.mxu1 %v3762_v59 }
 0xab6   : > { %1981 = vmatprep.subr.bf16.mxu1 %v3767_v60 }
 0xab9   : > { %1982 = vmatpush1.bf16.msra.mxu1 %v3765_v61  ;;  %v2056_v61 = vsub.s32 5, %v4872_v51 }
 0xaba   : > { %1983 = vmatprep.subr.bf16.mxu1 %v3770_v7 }
 0xabd   : > { %1984 = vmatpush1.bf16.msra.mxu1 %v3768_v8 }
 0xabe   : > { %1985 = vmatprep.subr.bf16.mxu1 %v3773_v9 }
 0xac1   : > { %1986 = vmatpush1.bf16.msra.mxu1 %v3771_v10 }
 0xac2   : > { %1987 = vmatprep.subr.bf16.mxu1 %v3776_v11 }
 0xac5   : > { %1988 = vmatpush1.bf16.msra.mxu1 %v3774_v12 }
 0xac6   : > { %1989 = vmatprep.subr.bf16.mxu1 %v3779_v13 }
 0xac9   : > { %1990 = vmatpush1.bf16.msra.mxu1 %v3777_v14 }
 0xaca   : > { %1991 = vmatprep.subr.bf16.mxu1 %v3782_v15 }
 0xacd   : > { %1992 = vmatpush1.bf16.msra.mxu1 %v3780_v16 }
 0xb83   : > { %v1783_v25 = vpop.f32.mrb[18].mxu1 }
 0xb84   : > { %v1787_v42 = vpack.c.bf16 %v1783_v25, %v1783_v25  ;;  %v3562_v43 = vpop.f32.mrb[19].mxu1  ;;  %v3796_v25 = vld [vmem:[%s4800_s27 + $0x30] sm:$0xff]  }
 0xb85   : > { %v3798_v43 = vld [vmem:[%s4800_s27 + $0x38] sm:$0xff]  }
 0xb86   : > { %3568 = vmatmul.mubr.msk.bf16.vlgmr.msra.gmra.mrb[16].mxu0 %vm960_vm4, %v1787_v42  ;;  %v3797_v42 = vld [vmem:[%s4800_s27 + $0x78] sm:$0xff]  }
 0xb87   : > { %3446 = vmatpush3.bf16.msra.mxu0 %v3784_v63  ;;  %v2213_v63 = vsub.s32 7, %v4872_v51 }
 0xb88   : > { %3447 = vmatprep.subr.bf16.mxu0 %v3785_v18  ;;  %v2209_v18 = vrot.slane %v4879_v54, %v2208_v17  ;;  %v3893_v17 = vld [vmem:[#allocation18 + $0x44] ss:$8 sps:$4 sm:$0xff] (!%p3299_p8)  }
 0xb8b   : > { %3448 = vmatpush3.bf16.msra.mxu0 %v3786_v19 }
 0xb8c   : > { %3449 = vmatprep.subr.bf16.mxu0 %v3787_v20  ;;  %v2214_v20 = vrot.slane %v4879_v54, %v2213_v63  ;;  %v3896_v63 = vld [vmem:[#allocation18 + $0x144] ss:$8 sps:$4 sm:$0xff] (!%p3299_p8)  }
 0xb8f   : > { %3450 = vmatpush3.bf16.msra.mxu0 %v3788_v21 }
 0xb90   : > { %3451 = vmatprep.subr.bf16.mxu0 %v3789_v22 }
 0xb93   : > { %3452 = vmatpush3.bf16.msra.mxu0 %v3790_v23 }
 0xb94   : > { %3453 = vmatprep.subr.bf16.mxu0 %v3791_v26  ;;  %v3819_v26 = vld [vmem:[#allocation17 + $0x4] ss:$16 sps:$4 sm:$0xff] (!%p3299_p8)  }
 0xb97   : > { %3454 = vmatpush3.bf16.msra.mxu0 %v3792_v27  ;;  %v3821_v27 = vld [vmem:[#allocation17 + $0xc] ss:$16 sps:$4 sm:$0xff] (!%p3299_p8)  }
 0xb98   : > { %3455 = vmatprep.subr.bf16.mxu0 %v3793_v28  ;;  %v4369_v28 = vmov (!%p3299_p8), 0   ;;  %2471 = vmatprep.subr.bf16.mxu1 (!%p3299_p8), %v3821_v27  ;;  %v3908_v27 = vld [vmem:[#allocation18 + $0x164] ss:$8 sps:$4 sm:$0xff] (!%p3299_p8)  }
 0xb9b   : > { %3456 = vmatpush3.bf16.msra.mxu0 %v3794_v29  ;;  %v3824_v29 = vld [vmem:[#allocation17 + $0x8] ss:$16 sps:$4 sm:$0xff] (!%p3299_p8)  }
 0xb9c   : > { %3457 = vmatprep.subr.bf16.mxu0 %v3795_v6  ;;  %v3843_v6 = vld [vmem:[#allocation17 + $0x84] ss:$16 sps:$4 sm:$0xff] (!%p3299_p8)  }
 0xb9f   : > { %3458 = vmatpush3.bf16.msra.mxu0 %v3796_v25  ;;  %v3845_v25 = vld [vmem:[#allocation17 + $0x8c] ss:$16 sps:$4 sm:$0xff] (!%p3299_p8)  }
 0xba0   : > { %3459 = vmatprep.subr.bf16.mxu0 %v3797_v42  ;;  %v3847_v42 = vld [vmem:[#allocation17 + $0x80] ss:$16 sps:$4 sm:$0xff] (!%p3299_p8)  }
 0xba3   : > { %3460 = vmatpush3.bf16.msra.mxu0 %v3798_v43  ;;  %v3848_v43 = vld [vmem:[#allocation17 + $0x88] ss:$16 sps:$4 sm:$0xff] (!%p3299_p8)  }
 0xba4   : > { %2430 = vmatprep.subr.bf16.mxu0 (!%p3299_p8), %v3819_v26  ;;  %v3905_v26 = vld [vmem:[#allocation18 + $0x64] ss:$8 sps:$4 sm:$0xff] (!%p3299_p8)  }
 0xc59   : > { %v1837_v47 = vpop.f32.mrb[16].mxu0 }
 0xc5a   : > { %v1843_v24 = vadd.f32 %v1837_v47, %v1621_v34  ;;  %v3569_v48 = vpop.f32.mrb[17].mxu0  ;;  %v1869_v34 = vsub.s32 3, %v4872_v51 }
 0xc5b   : > { %v1840_v49 = vpop.f32.mrb[18].mxu0 }
 0xc5c   : > { %v1848_v50 = vadd.f32 %v1847_v46, %v1843_v24  ;;  %v3570_v52 = vpop.f32.mrb[19].mxu0  ;;  %v1870_v38 = vrot.slane %v4879_v54, %v1869_v34  ;;  %v1891_v46 = vsub.s32 4, %v4872_v51  ;;  %v3823_v51 = vld [vmem:[#allocation17] ss:$16 sps:$4 sm:$0xff] (!%p3299_p8)   ;;  %v3831_v34 = vld [vmem:[#allocation17 + $0x44] ss:$16 sps:$4 sm:$0xff] (!%p3299_p8)  }
 0xc5e   : > { %v1849_v55 = vadd.f32 %v1848_v50, %v4855_v45  ;;  %v1892_v47 = vrot.slane %v4879_v54, %v1891_v46  ;;  %v1896_v24 = vrot.slane %v4876_v53, %v1891_v46  ;;  %v3849_v46 = vld [vmem:[#allocation17 + $0xa4] ss:$16 sps:$4 sm:$0xff] (!%p3299_p8)  }
 0xc60   : > { %1850 = vadd.xlane.f32.xlu1 %v1849_v55 }
 0xced   : > { %v1851_v45 = vpop.xlane.xlu1 %1850 }
 0xcee   : > { %v1853_v62 = vmul.f32 0.0078125, %v1851_v45 }
 0xcf0   : > { %v1854_v4 = vsub.f32 %v1849_v55, %v1853_v62  ;;  %v2057_v62 = vrot.slane %v4879_v54, %v2056_v61  ;;  %v3827_v54 = vld [vmem:[#allocation17 + $0x2c] ss:$16 sps:$4 sm:$0xff] (!%p3299_p8)  }
 0xcf1   : > { %v3872_v61 = vld [vmem:[#allocation18 + $0x104] ss:$8 sps:$4 sm:$0xff] (!%p3299_p8)  }
 0xcf2   : > { %v1855_v5 = vmul.f32 %v1854_v4, %v1854_v4 }
 0xcf4   : > { %1856 = vadd.xlane.f32.xlu0 %v1855_v5 }
 0xd81   : > { %v1857_v30 = vpop.xlane.xlu0 %1856 }
 0xd82   : > { %v1858_v31 = vmul.f32 0.0078125, %v1857_v30  ;;  %v3825_v30 = vld [vmem:[#allocation17 + $0x24] ss:$16 sps:$4 sm:$0xff] (!%p3299_p8)  }
 0xd84   : > { %v1859_v32 = vadd.f32 1e-05, %v1858_v31  ;;  %v3829_v31 = vld [vmem:[#allocation17 + $0x20] ss:$16 sps:$4 sm:$0xff] (!%p3299_p8)  }
 0xd86   : > { %3815 = vrsqrt.f32 %v1859_v32  ;;  %v3830_v32 = vld [vmem:[#allocation17 + $0x28] ss:$16 sps:$4 sm:$0xff] (!%p3299_p8)  }
 0xd90   : > { %v3816_v36 = vpop.eup %3815 }
 0xd91   : > { %v1861_v37 = vmul.f32 %v3816_v36, %v1854_v4  ;;  %v3835_v36 = vld [vmem:[#allocation17 + $0x40] ss:$16 sps:$4 sm:$0xff] (!%p3299_p8)  }
 0xd93   : > { %v1866_v39 = vmul.f32 %v1865_v35, %v1861_v37  ;;  %v3833_v35 = vld [vmem:[#allocation17 + $0x4c] ss:$16 sps:$4 sm:$0xff] (!%p3299_p8)   ;;  %v3836_v37 = vld [vmem:[#allocation17 + $0x48] ss:$16 sps:$4 sm:$0xff] (!%p3299_p8)  }
 0xd95   : > { %v1871_v40 = vadd.f32 %v1870_v38, %v1866_v39  ;;  %v3837_v38 = vld [vmem:[#allocation17 + $0x64] ss:$16 sps:$4 sm:$0xff] (!%p3299_p8)   ;;  %v3839_v39 = vld [vmem:[#allocation17 + $0x6c] ss:$16 sps:$4 sm:$0xff] (!%p3299_p8)  }
 0xd97   : > { %v1872_v41 = vpack.c.bf16 %v1871_v40, %v1871_v40 }
 0xd99   : > { %2010 = vmatmul.mubr.bf16.vlgmr.msra.gmra.mrb[20].mxu1 %v1872_v41  ;;  %v3842_v41 = vld [vmem:[#allocation17 + $0x68] ss:$16 sps:$4 sm:$0xff] (!%p3299_p8)  }
 0xd9a   : > { %2503 = vmatprep.mubr.bf16.mxu1 (!%p3299_p8), %v4369_v28  ;;  %2472 = vmatpush1.bf16.msra.mxu1 (!%p3299_p8), %v3824_v29  ;;  %v3911_v29 = vld [vmem:[#allocation18 + $0x74] ss:$8 sps:$4 sm:$0xff] (!%p3299_p8)  }
 0xd9b   : > { %2473 = vmatprep.subr.bf16.mxu1 (!%p3299_p8), %v3827_v54  ;;  %v3909_v54 = vld [vmem:[#allocation18 + $0x70] ss:$8 sps:$4 sm:$0xff] (!%p3299_p8)  }
 0xd9e   : > { %2474 = vmatpush1.bf16.msra.mxu1 (!%p3299_p8), %v3830_v32  ;;  %v3917_v32 = vld [vmem:[#allocation18 + $0x84] ss:$8 sps:$4 sm:$0xff] (!%p3299_p8)  }
 0xd9f   : > { %2475 = vmatprep.subr.bf16.mxu1 (!%p3299_p8), %v3833_v35  ;;  %v3915_v35 = vld [vmem:[#allocation18 + $0x80] ss:$8 sps:$4 sm:$0xff] (!%p3299_p8)  }
 0xda2   : > { %2476 = vmatpush1.bf16.msra.mxu1 (!%p3299_p8), %v3836_v37  ;;  %v3923_v37 = vld [vmem:[#allocation18 + $0x94] ss:$8 sps:$4 sm:$0xff] (!%p3299_p8)  }
 0xda3   : > { %2477 = vmatprep.subr.bf16.mxu1 (!%p3299_p8), %v3839_v39  ;;  %v3921_v39 = vld [vmem:[#allocation18 + $0x90] ss:$8 sps:$4 sm:$0xff] (!%p3299_p8)  }
 0xda6   : > { %2478 = vmatpush1.bf16.msra.mxu1 (!%p3299_p8), %v3842_v41  ;;  %v3929_v41 = vld [vmem:[#allocation18 + $0xa4] ss:$8 sps:$4 sm:$0xff] (!%p3299_p8)  }
 0xda7   : > { %2479 = vmatprep.subr.bf16.mxu1 (!%p3299_p8), %v3845_v25  ;;  %v3927_v25 = vld [vmem:[#allocation18 + $0xa0] ss:$8 sps:$4 sm:$0xff] (!%p3299_p8)  }
 0xdaa   : > { %2480 = vmatpush1.bf16.msra.mxu1 (!%p3299_p8), %v3848_v43  ;;  %v3935_v43 = vld [vmem:[#allocation18 + $0xb4] ss:$8 sps:$4 sm:$0xff] (!%p3299_p8)  }
 0xe6c   : > { %v2011_v48 = vpop.f32.mrb[20].mxu1 }
 0xe6d   : > { %v2012_v49 = vadd.f32 %v2011_v48, %v1892_v47  ;;  %v2013_v50 = vpop.f32.mrb[21].mxu1  ;;  %v3851_v47 = vld [vmem:[#allocation17 + $0xac] ss:$16 sps:$4 sm:$0xff] (!%p3299_p8)   ;;  %v3854_v48 = vld [vmem:[#allocation17 + $0xa8] ss:$16 sps:$4 sm:$0xff] (!%p3299_p8)  }
 0xe6e   : > { %v2014_v52 = vadd.f32 %v2013_v50, %v1896_v24  ;;  %v2015_v55 = vpop.f32.mrb[22].mxu1  ;;  %v3853_v24 = vld [vmem:[#allocation17 + $0xa0] ss:$16 sps:$4 sm:$0xff] (!%p3299_p8)   ;;  %2481 = vmatprep.subr.bf16.mxu1 (!%p3299_p8), %v3851_v47  ;;  %v3857_v50 = vld [vmem:[#allocation17 + $0xcc] ss:$16 sps:$4 sm:$0xff] (!%p3299_p8)  }
 0xe6f   : > { %v2018_v56 = vmax.f32 %v2012_v49, 0.0  ;;  %v2016_v57 = vpop.f32.mrb[23].mxu1  ;;  %v3855_v49 = vld [vmem:[#allocation17 + $0xc4] ss:$16 sps:$4 sm:$0xff] (!%p3299_p8)   ;;  %v3860_v55 = vld [vmem:[#allocation17 + $0xc8] ss:$16 sps:$4 sm:$0xff] (!%p3299_p8)   ;;  %2482 = vmatpush1.bf16.msra.mxu1 (!%p3299_p8), %v3854_v48 }
 0xe70   : > { %v2019_v58 = vmax.f32 %v2014_v52, 0.0  ;;  %v3859_v52 = vld [vmem:[#allocation17 + $0xc0] ss:$16 sps:$4 sm:$0xff] (!%p3299_p8)   ;;  %2483 = vmatprep.subr.bf16.mxu1 (!%p3299_p8), %v3857_v50  ;;  %v3863_v57 = vld [vmem:[#allocation17 + $0xec] ss:$16 sps:$4 sm:$0xff] (!%p3299_p8)  }
 0xe71   : > { %v2020_v60 = vpack.c.bf16 %v2018_v56, %v2018_v56  ;;  %v3861_v56 = vld [vmem:[#allocation17 + $0xe4] ss:$16 sps:$4 sm:$0xff] (!%p3299_p8)   ;;  %v3933_v47 = vld [vmem:[#allocation18 + $0xb0] ss:$8 sps:$4 sm:$0xff] (!%p3299_p8)   ;;  %v3939_v50 = vld [vmem:[#allocation18 + $0xc0] ss:$8 sps:$4 sm:$0xff] (!%p3299_p8)  }
 0xe72   : > { %v2021_v59 = vpack.c.bf16 %v2019_v58, %v2019_v58  ;;  %v3865_v58 = vld [vmem:[#allocation17 + $0xe0] ss:$16 sps:$4 sm:$0xff] (!%p3299_p8)   ;;  %v3941_v48 = vld [vmem:[#allocation18 + $0xc4] ss:$8 sps:$4 sm:$0xff] (!%p3299_p8)  }
 0xe73   : > { %2484 = vmatpush1.bf16.msra.mxu1 (!%p3299_p8), %v3860_v55  ;;  %v3947_v55 = vld [vmem:[#allocation18 + $0xd4] ss:$8 sps:$4 sm:$0xff] (!%p3299_p8)  }
 0xe74   : > { %2186 = vmatprep.mubr.bf16.mxu0 %v2021_v59  ;;  %v3866_v59 = vld [vmem:[#allocation17 + $0xe8] ss:$16 sps:$4 sm:$0xff] (!%p3299_p8)   ;;  %2485 = vmatprep.subr.bf16.mxu1 (!%p3299_p8), %v3863_v57 }
 0xe75   : > { %2187 = vmatmul.mubr.bf16.vlgmr.msra.gmra.mrb[20].mxu0 %v2020_v60  ;;  %v3869_v60 = vld [vmem:[#allocation18 + $0x4] ss:$8 sps:$4 sm:$0xff] (!%p3299_p8)   ;;  %v3945_v57 = vld [vmem:[#allocation18 + $0xd0] ss:$8 sps:$4 sm:$0xff] (!%p3299_p8)  }
 0xe76   : > { %2462 = vmatprep.mubr.bf16.mxu0 (!%p3299_p8), %v4369_v28  ;;  %2431 = vmatpush1.bf16.msra.mxu0 (!%p3299_p8), %v3823_v51  ;;  %v3903_v28 = vld [vmem:[#allocation18 + $0x60] ss:$8 sps:$4 sm:$0xff] (!%p3299_p8)  }
 0xe77   : > { %2432 = vmatprep.subr.bf16.mxu0 (!%p3299_p8), %v3825_v30  ;;  %2486 = vmatpush1.bf16.msra.mxu1 (!%p3299_p8), %v3866_v59  ;;  %v3906_v51 = vld [vmem:[#allocation18 + $0x160] ss:$8 sps:$4 sm:$0xff] (!%p3299_p8)   ;;  %v3914_v30 = vld [vmem:[#allocation18 + $0x174] ss:$8 sps:$4 sm:$0xff] (!%p3299_p8)   ;;  %v3953_v59 = vld [vmem:[#allocation18 + $0xe4] ss:$8 sps:$4 sm:$0xff] (!%p3299_p8)  }
 0xe78   : > { %2908 = vmatprep.subr.bf16.mxu1 (!%p3299_p8), %v3869_v60  ;;  %v3956_v60 = vld [vmem:[#allocation18 + $0x1e4] ss:$8 sps:$4 sm:$0xff] (!%p3299_p8)  }
 0xe7a   : > { %2433 = vmatpush1.bf16.msra.mxu0 (!%p3299_p8), %v3829_v31  ;;  %v3912_v31 = vld [vmem:[#allocation18 + $0x170] ss:$8 sps:$4 sm:$0xff] (!%p3299_p8)  }
 0xe7b   : > { %2434 = vmatprep.subr.bf16.mxu0 (!%p3299_p8), %v3831_v34  ;;  %v3920_v34 = vld [vmem:[#allocation18 + $0x184] ss:$8 sps:$4 sm:$0xff] (!%p3299_p8)  }
 0xe7e   : > { %2435 = vmatpush1.bf16.msra.mxu0 (!%p3299_p8), %v3835_v36  ;;  %v3918_v36 = vld [vmem:[#allocation18 + $0x180] ss:$8 sps:$4 sm:$0xff] (!%p3299_p8)  }
 0xe7f   : > { %2436 = vmatprep.subr.bf16.mxu0 (!%p3299_p8), %v3837_v38  ;;  %v3926_v38 = vld [vmem:[#allocation18 + $0x194] ss:$8 sps:$4 sm:$0xff] (!%p3299_p8)  }
 0xf48   : > { %v3461_v45 = vpop.f32.mrb[20].mxu0 }
 0xf49   : > { %v3462_v4 = vpop.f32.mrb[21].mxu0 }
 0xf4a   : > { %v3463_v5 = vadd.f32 %v3462_v4, %v3461_v45  ;;  %v3464_v53 = vpop.f32.mrb[22].mxu0  ;;  %v3870_v4 = vld [vmem:[#allocation18 + $0x100] ss:$8 sps:$4 sm:$0xff] (!%p3299_p8)  }
 0xf4b   : > { %v3465_v7 = vpop.f32.mrb[23].mxu0  ;;  %v3878_v53 = vld [vmem:[#allocation18 + $0x114] ss:$8 sps:$4 sm:$0xff] (!%p3299_p8)  }
 0xf4c   : > { %v2189_v8 = vadd.f32 %v3463_v5, %v2057_v62  ;;  %v3867_v62 = vld [vmem:[#allocation18] ss:$8 sps:$4 sm:$0xff] (!%p3299_p8)   ;;  %v3875_v5 = vld [vmem:[#allocation18 + $0x14] ss:$8 sps:$4 sm:$0xff] (!%p3299_p8)   ;;  %v3873_v7 = vld [vmem:[#allocation18 + $0x10] ss:$8 sps:$4 sm:$0xff] (!%p3299_p8)  }
 0xf4e   : > { %v2194_v9 = vadd.f32 %v2189_v8, %v1871_v40  ;;  %v3841_v40 = vld [vmem:[#allocation17 + $0x60] ss:$16 sps:$4 sm:$0xff] (!%p3299_p8)  }
 0xf4f   : > { %2437 = vmatpush1.bf16.msra.mxu0 (!%p3299_p8), %v3841_v40  ;;  %v3876_v8 = vld [vmem:[#allocation18 + $0x110] ss:$8 sps:$4 sm:$0xff] (!%p3299_p8)  }
 0xf50   : > { %2195 = vadd.xlane.f32.xlu0 %v2194_v9  ;;  %2438 = vmatprep.subr.bf16.mxu0 (!%p3299_p8), %v3843_v6  ;;  %v3924_v40 = vld [vmem:[#allocation18 + $0x190] ss:$8 sps:$4 sm:$0xff] (!%p3299_p8)   ;;  %v3932_v6 = vld [vmem:[#allocation18 + $0x1a4] ss:$8 sps:$4 sm:$0xff] (!%p3299_p8)  }
 0xf53   : > { %2439 = vmatpush1.bf16.msra.mxu0 (!%p3299_p8), %v3847_v42  ;;  %v3930_v42 = vld [vmem:[#allocation18 + $0x1a0] ss:$8 sps:$4 sm:$0xff] (!%p3299_p8)  }
 0xf54   : > { %2440 = vmatprep.subr.bf16.mxu0 (!%p3299_p8), %v3849_v46  ;;  %v3938_v46 = vld [vmem:[#allocation18 + $0x1b4] ss:$8 sps:$4 sm:$0xff] (!%p3299_p8)  }
 0xf57   : > { %2441 = vmatpush1.bf16.msra.mxu0 (!%p3299_p8), %v3853_v24  ;;  %v3936_v24 = vld [vmem:[#allocation18 + $0x1b0] ss:$8 sps:$4 sm:$0xff] (!%p3299_p8)  }
 0xf58   : > { %2442 = vmatprep.subr.bf16.mxu0 (!%p3299_p8), %v3855_v49  ;;  %v3944_v49 = vld [vmem:[#allocation18 + $0x1c4] ss:$8 sps:$4 sm:$0xff] (!%p3299_p8)  }
 0xf5b   : > { %2443 = vmatpush1.bf16.msra.mxu0 (!%p3299_p8), %v3859_v52  ;;  %v3942_v52 = vld [vmem:[#allocation18 + $0x1c0] ss:$8 sps:$4 sm:$0xff] (!%p3299_p8)  }
 0xf5c   : > { %2444 = vmatprep.subr.bf16.mxu0 (!%p3299_p8), %v3861_v56  ;;  %v3950_v56 = vld [vmem:[#allocation18 + $0x1d4] ss:$8 sps:$4 sm:$0xff] (!%p3299_p8)  }
 0xf5f   : > { %2445 = vmatpush1.bf16.msra.mxu0 (!%p3299_p8), %v3865_v58  ;;  %v3948_v58 = vld [vmem:[#allocation18 + $0x1d0] ss:$8 sps:$4 sm:$0xff] (!%p3299_p8)  }
 0xf60   : > { %2949 = vmatprep.subr.bf16.mxu0 (!%p3299_p8), %v3872_v61  ;;  %v3951_v61 = vld [vmem:[#allocation18 + $0xe0] ss:$8 sps:$4 sm:$0xff] (!%p3299_p8)  }
 0xfdd   : > { %v2196_v10 = vpop.xlane.xlu0 %2195 }
 0xfde   : > { %v2197_v11 = vmul.f32 0.0078125, %v2196_v10  ;;  %v3884_v10 = vld [vmem:[#allocation18 + $0x124] ss:$8 sps:$4 sm:$0xff] (!%p3299_p8)  }
 0xfe0   : > { %v2198_v12 = vsub.f32 %v2194_v9, %v2197_v11  ;;  %v3881_v9 = vld [vmem:[#allocation18 + $0x24] ss:$8 sps:$4 sm:$0xff] (!%p3299_p8)   ;;  %v3879_v11 = vld [vmem:[#allocation18 + $0x20] ss:$8 sps:$4 sm:$0xff] (!%p3299_p8)  }
 0xfe2   : > { %v2199_v13 = vmul.f32 %v2198_v12, %v2198_v12 }
 0xfe4   : > { %2200 = vadd.xlane.f32.xlu0 %v2199_v13  ;;  %v3887_v13 = vld [vmem:[#allocation18 + $0x34] ss:$8 sps:$4 sm:$0xff] (!%p3299_p8)  }
0x1071   : > { %v2201_v14 = vpop.xlane.xlu0 %2200 }
0x1072   : > { %v2202_v15 = vmul.f32 0.0078125, %v2201_v14  ;;  %v3890_v14 = vld [vmem:[#allocation18 + $0x134] ss:$8 sps:$4 sm:$0xff] (!%p3299_p8)  }
0x1074   : > { %v2203_v16 = vadd.f32 1e-05, %v2202_v15  ;;  %v3885_v15 = vld [vmem:[#allocation18 + $0x30] ss:$8 sps:$4 sm:$0xff] (!%p3299_p8)  }
0x1076   : > { %3817 = vrsqrt.f32 %v2203_v16  ;;  %v3888_v16 = vld [vmem:[#allocation18 + $0x130] ss:$8 sps:$4 sm:$0xff] (!%p3299_p8)  }
0x1080   : > { %v3818_v19 = vpop.eup %3817 }
0x1081   : > { %v2205_v21 = vmul.f32 %v3818_v19, %v2198_v12  ;;  %2220 = sbr.rel (%p3299_p8) target bundleno = 4669 (0x123d), region = 108  ;;  %v3882_v12 = vld [vmem:[#allocation18 + $0x120] ss:$8 sps:$4 sm:$0xff] (!%p3299_p8)  }
0x1082   : > { %v3894_v19 = vld [vmem:[#allocation18 + $0x140] ss:$8 sps:$4 sm:$0xff] (!%p3299_p8)  }
0x1083   : > { %v2210_v22 = vmul.f32 %v2209_v18, %v2205_v21  ;;  %v3891_v18 = vld [vmem:[#allocation18 + $0x40] ss:$8 sps:$4 sm:$0xff] (!%p3299_p8)   ;;  %v3902_v21 = vld [vmem:[#allocation18 + $0x154] ss:$8 sps:$4 sm:$0xff] (!%p3299_p8)  }
0x1085   : > { %v5023_v23 = vadd.f32 %v2214_v20, %v2210_v22  ;;  %v3899_v20 = vld [vmem:[#allocation18 + $0x54] ss:$8 sps:$4 sm:$0xff] (!%p3299_p8)   ;;  %v3897_v22 = vld [vmem:[#allocation18 + $0x50] ss:$8 sps:$4 sm:$0xff] (!%p3299_p8)  }
0x1087   : > { %2216 = vst [vmem:[#allocation2] sm:$0xff] %v5023_v23  ;;  %v2221_v45 = vpack.c.bf16 (!%p3299_p8), %v5023_v23, %v5023_v23  ;;  %v3900_v23 = vld [vmem:[#allocation18 + $0x150] ss:$8 sps:$4 sm:$0xff] (!%p3299_p8)  }
0x1089   : > { %2463 = vmatmul.mubr.bf16.vlgmr.msra.gmra.mrb[0].mxu0 %v2221_v45  ;;  %2504 = vmatmul.mubr.bf16.vlgmr.msra.gmra.mrb[0].mxu1 %v2221_v45  ;;  %v3954_v45 = vld [vmem:[#allocation18 + $0x1e0] ss:$8 sps:$4 sm:$0xff]  }
0x108a   : > { %2909 = vmatpush1.bf16.msra.mxu1 %v3867_v62  ;;  %2950 = vmatpush1.bf16.msra.mxu0 %v3870_v4  ;;  %v3959_v62 = vld [vmem:[#allocation18 + $0xf4] ss:$8 sps:$4 sm:$0xff]  }
0x108b   : > { %2910 = vmatprep.subr.bf16.mxu1 %v3875_v5  ;;  %2951 = vmatprep.subr.bf16.mxu0 %v3878_v53  ;;  %v3962_v4 = vld [vmem:[#allocation18 + $0x1f4] ss:$8 sps:$4 sm:$0xff]   ;;  %v3957_v5 = vld [vmem:[#allocation18 + $0xf0] ss:$8 sps:$4 sm:$0xff]  }
0x108c   : > { %v3960_v53 = vld [vmem:[#allocation18 + $0x1f0] ss:$8 sps:$4 sm:$0xff]  }
0x108e   : > { %2911 = vmatpush1.bf16.msra.mxu1 %v3873_v7  ;;  %2952 = vmatpush1.bf16.msra.mxu0 %v3876_v8  ;;  %v2257_v7 = vrot.slane %v4816_v0, %v4970_v44  ;;  %v2265_v8 = vrot.slane %v4820_v2, %v4970_v44 }
0x108f   : > { %2912 = vmatprep.subr.bf16.mxu1 %v3881_v9  ;;  %2953 = vmatprep.subr.bf16.mxu0 %v3884_v10  ;;  %v2261_v9 = vrot.slane %v4818_v1, %v4970_v44  ;;  %v2269_v10 = vrot.slane %v4822_v3, %v4970_v44  ;;  %v2583_v3 = vrot.slane %v4816_v0, %v5004_v33 }
0x1090   : > { %v2587_v44 = vrot.slane %v4818_v1, %v5004_v33 }
0x1092   : > { %2913 = vmatpush1.bf16.msra.mxu1 %v3879_v11  ;;  %2954 = vmatpush1.bf16.msra.mxu0 %v3882_v12 }
0x1093   : > { %2914 = vmatprep.subr.bf16.mxu1 %v3887_v13  ;;  %2955 = vmatprep.subr.bf16.mxu0 %v3890_v14 }
0x1096   : > { %2915 = vmatpush1.bf16.msra.mxu1 %v3885_v15  ;;  %2956 = vmatpush1.bf16.msra.mxu0 %v3888_v16 }
0x1097   : > { %2916 = vmatprep.subr.bf16.mxu1 %v3893_v17  ;;  %2957 = vmatprep.subr.bf16.mxu0 %v3896_v63 }
0x109a   : > { %2917 = vmatpush1.bf16.msra.mxu1 %v3891_v18  ;;  %2958 = vmatpush1.bf16.msra.mxu0 %v3894_v19 }
0x109b   : > { %2918 = vmatprep.subr.bf16.mxu1 %v3899_v20  ;;  %2959 = vmatprep.subr.bf16.mxu0 %v3902_v21 }
0x109e   : > { %2919 = vmatpush1.bf16.msra.mxu1 %v3897_v22  ;;  %2960 = vmatpush1.bf16.msra.mxu0 %v3900_v23 }
0x109f   : > { %2920 = vmatprep.subr.bf16.mxu1 %v3905_v26  ;;  %2961 = vmatprep.subr.bf16.mxu0 %v3908_v27 }
0x10a2   : > { %2921 = vmatpush1.bf16.msra.mxu1 %v3903_v28  ;;  %2962 = vmatpush1.bf16.msra.mxu0 %v3906_v51 }
0x10a3   : > { %2922 = vmatprep.subr.bf16.mxu1 %v3911_v29  ;;  %2963 = vmatprep.subr.bf16.mxu0 %v3914_v30 }
0x10a6   : > { %2923 = vmatpush1.bf16.msra.mxu1 %v3909_v54  ;;  %2964 = vmatpush1.bf16.msra.mxu0 %v3912_v31 }
0x10a7   : > { %2924 = vmatprep.subr.bf16.mxu1 %v3917_v32  ;;  %2965 = vmatprep.subr.bf16.mxu0 %v3920_v34 }
0x10aa   : > { %2925 = vmatpush1.bf16.msra.mxu1 %v3915_v35  ;;  %2966 = vmatpush1.bf16.msra.mxu0 %v3918_v36 }
0x10ab   : > { %2926 = vmatprep.subr.bf16.mxu1 %v3923_v37  ;;  %2967 = vmatprep.subr.bf16.mxu0 %v3926_v38 }
0x10ae   : > { %2927 = vmatpush1.bf16.msra.mxu1 %v3921_v39  ;;  %2968 = vmatpush1.bf16.msra.mxu0 %v3924_v40 }
0x10af   : > { %2928 = vmatprep.subr.bf16.mxu1 %v3929_v41  ;;  %2969 = vmatprep.subr.bf16.mxu0 %v3932_v6 }
0x10b2   : > { %2929 = vmatpush1.bf16.msra.mxu1 %v3927_v25  ;;  %2970 = vmatpush1.bf16.msra.mxu0 %v3930_v42 }
0x10b3   : > { %2930 = vmatprep.subr.bf16.mxu1 %v3935_v43  ;;  %2971 = vmatprep.subr.bf16.mxu0 %v3938_v46 }
0x10b6   : > { %2931 = vmatpush1.bf16.msra.mxu1 %v3933_v47  ;;  %2972 = vmatpush1.bf16.msra.mxu0 %v3936_v24 }
0x10b7   : > { %2932 = vmatprep.subr.bf16.mxu1 %v3941_v48  ;;  %2973 = vmatprep.subr.bf16.mxu0 %v3944_v49 }
0x10ba   : > { %2933 = vmatpush1.bf16.msra.mxu1 %v3939_v50  ;;  %2974 = vmatpush1.bf16.msra.mxu0 %v3942_v52 }
0x10bb   : > { %2934 = vmatprep.subr.bf16.mxu1 %v3947_v55  ;;  %2975 = vmatprep.subr.bf16.mxu0 %v3950_v56 }
0x10be   : > { %2935 = vmatpush1.bf16.msra.mxu1 %v3945_v57  ;;  %2976 = vmatpush1.bf16.msra.mxu0 %v3948_v58 }
0x10bf   : > { %2936 = vmatprep.subr.bf16.mxu1 %v3953_v59  ;;  %2977 = vmatprep.subr.bf16.mxu0 %v3956_v60 }
0x10c2   : > { %2937 = vmatpush1.bf16.msra.mxu1 %v3951_v61  ;;  %2978 = vmatpush1.bf16.msra.mxu0 %v3954_v45 }
0x10c3   : > { %2938 = vmatprep.subr.bf16.mxu1 %v3959_v62  ;;  %2979 = vmatprep.subr.bf16.mxu0 %v3962_v4 }
0x10c6   : > { %2939 = vmatpush1.bf16.msra.mxu1 %v3957_v5  ;;  %2980 = vmatpush1.bf16.msra.mxu0 %v3960_v53 }
0x115c   : > { %v2464_v11 = vpop.f32.mrb[0].mxu0  ;;  %v2505_v12 = vpop.f32.mrb[0].mxu1 }
0x115d   : > { %v2465_v13 = vadd.f32 %v2464_v11, %v2257_v7  ;;  %v2506_v14 = vadd.f32 %v2505_v12, %v2265_v8  ;;  %v2466_v15 = vpop.f32.mrb[1].mxu0  ;;  %v2507_v16 = vpop.f32.mrb[1].mxu1 }
0x115e   : > { %v2467_v17 = vadd.f32 %v2466_v15, %v2261_v9  ;;  %v2508_v63 = vadd.f32 %v2507_v16, %v2269_v10  ;;  %v2468_v18 = vpop.f32.mrb[2].mxu0  ;;  %v2509_v19 = vpop.f32.mrb[2].mxu1 }
0x115f   : > { %v2514_v20 = vpack.c.bf16 %v2506_v14, %v2506_v14  ;;  %v2469_v21 = vpop.f32.mrb[3].mxu0  ;;  %v2510_v22 = vpop.f32.mrb[3].mxu1  ;;  %v2512_v26 = vpack.c.bf16 %v2465_v13, %v2465_v13 }
0x1160   : > { %v2513_v2 = vpack.c.bf16 %v2467_v17, %v2467_v17  ;;  %v2515_v23 = vpack.c.bf16 %v2508_v63, %v2508_v63 }
0x1162   : > { %2940 = vmatprep.mubr.bf16.mxu1 %v2513_v2  ;;  %2981 = vmatprep.mubr.bf16.mxu0 %v2515_v23 }
0x1163   : > { %2941 = vmatmul.mubr.bf16.vlgmr.msra.gmra.mrb[4].mxu1 %v2512_v26  ;;  %2982 = vmatmul.mubr.bf16.vlgmr.msra.gmra.mrb[4].mxu0 %v2514_v20 }
0x1236   : > { %v2942_v27 = vpop.f32.mrb[4].mxu1  ;;  %v2983_v28 = vpop.f32.mrb[4].mxu0 }
0x1237   : > { %v2943_v51 = vadd.f32 %v2942_v27, %v2583_v3  ;;  %v2944_v29 = vpop.f32.mrb[5].mxu1  ;;  %v2985_v30 = vpop.f32.mrb[5].mxu0 }
0x1238   : > { %v2945_v54 = vadd.f32 %v2944_v29, %v2587_v44  ;;  %v2946_v31 = vpop.f32.mrb[6].mxu1  ;;  %v2987_v32 = vpop.f32.mrb[6].mxu0 }
0x1239   : > { %v2984_v34 = vadd.f32 %v2983_v28, %v2943_v51  ;;  %v2947_v35 = vpop.f32.mrb[7].mxu1  ;;  %v2988_v36 = vpop.f32.mrb[7].mxu0 }
0x123a   : > { %v2986_v37 = vadd.f32 %v2985_v30, %v2945_v54 }
0x123b   : > { %2990 = vst [vmem:[#allocation20] sm:$0xff] %v2984_v34 }
0x123c   : > { %2991 = vst [vmem:[#allocation20 + $0x8] sm:$0xff] %v2986_v37 }
0x123d PF: > { %p3658_p1 = scmp.eq.s32.totalorder %s4445_s17, 1  ;;  %s4370_s11 = smov [#allocation20]  }
0x123e   : > { %s2999_s13 = sshll.u32 %s4370_s11, 4  ;;  %s3000_s13 = int_to_ptr.vmem [resolvable:$true] %s2999_s13 }
0x123f   : > { %s4253_s30 = scalar_lea.vmem %s3000_s13, 256  ;;  %p4260_p11 = scmp.lt.s32.totalorder %s3000_s13, %s3000_s13 }
0x1240   : > { %p4254_p4 = scmp.ne.s32.totalorder %s3000_s13, %s4253_s30  ;;  %p4261_p13 = scmp.lt.s32.totalorder %s4253_s30, %s4253_s30 }
0x1242   : > { %p4255_p10 = pnand %p4254_p4, %p3658_p1  ;;  %p4262_p2 = por %p4261_p13, %p4260_p11 }
0x1244   : > { %p4256_p5 = pneg %p4255_p10 }
0x1246   : > { %p4263_p6 = pnand %p4262_p2, %p4256_p5 }
0x1248   : > { %4266 = shalt.err (!%p4263_p6)
}
0x1249   : > { %s5159_s8 = sld [smem:[#allocation38_spill]] }
0x124f   : > { %s4267_s25 = scalar_lea.hbm %s5159_s8, 256 }
0x1250   : > { %p4268_p9 = scmp.ne.s32.totalorder %s5159_s8, %s4267_s25  ;;  %p4273_p7 = scmp.lt.u32.totalorder %s4267_s25, %s5159_s8 }
0x1252   : > { %p4269_p12 = pnand %p4268_p9, %p3658_p1 }
0x1254   : > { %p4270_p3 = pneg %p4269_p12 }
0x1256   : > { %p4275_p0 = pnand %p4273_p7, %p4270_p3 }
0x1258   : > { %4278 = shalt.err (!%p4275_p0)
}
0x1259   : > { %3612 = dma.vmem_to_hbm [thread:$0]  (%p3658_p1), %s3000_s13, 256, %s5159_s8, [#allocation5]  }
0x125a   : > { %4324 = dma.done.wait (%p3658_p1), [#allocation5], 256  }
0x125b   : > { %4326 = vsyncadd (%p3658_p1), [#allocation5], 4294967040 }
0x125c PF: > { %s5160_s16 = sld [smem:[#allocation32_spill]]  ;;  %s5161_s13 = sld [smem:[#allocation29_spill]] }
0x125d   : > { %s5162_s14 = sld [smem:[#allocation30_spill]]  ;;  %s5163_s15 = sld [smem:[#allocation33_spill]] }
0x1262   : > { %p30_p8 = scmp.ge.s32.totalorder %s5160_s16, 4  }
0x1264   :  { %32 = sbr.rel (!%p30_p8) target bundleno = 17 (0x11), region = 174 }
0x126b   :  { %3012 = vsyncpa [#allocation4], 1 }
0x126c   :  { %3014 = vsyncpa [#allocation4 + $0x1], 1 }
0x126d   :  { %3015 = vsyncpa [#allocation7], 1 }
0x126e   :  { %3016 = vsyncpa [#allocation10], 1 }
0x126f   :  { %3018 = vsyncpa [#allocation10 + $0x1], 1 }
0x1270   :  { %3019 = vsyncpa [#allocation13], 1 }
0x1271   :  { %3021 = vsyncpa [#allocation13 + $0x1], 1 }
0x1272   :  { %3022 = vsyncpa [#allocation16], 1 }
0x1273   :  { %3024 = vsyncpa [#allocation16 + $0x1], 1 }
0x1274   :  { %3025 = vsyncpa [#allocation19], 1 }
0x1275   :  { %3026 = vsyncpa [#allocation5], 1 }
0x1276   :  { %3028 = vsyncpa [#allocation5 + $0x1], 1 }

</bundles_post_ra>
